<compile_context>
chip_gen: v7x
topology: tpu7x:2x2x1
jax: 0.10.0
libtpu: 0.0.40
codegen_flags: <defaults>
</compile_context>

<pallas_src>
import functools
import math

import jax
import jax.numpy as jnp
from jax import lax
from jax.experimental import pallas as pl
from jax.experimental.pallas import tpu as pltpu


# -----------------------------------------------------------------------------
# Fused kernel.  grid = (batch_tiles, num_layers); layer axis streams weights.
# -----------------------------------------------------------------------------
def _decoder_stack_kernel(x_ref, mask_ref, wq_ref, bq_ref, wk_ref, bk_ref,
                          wv_ref, bv_ref, wo_ref, bo_ref, w1_ref,
                          b1_ref, w2_ref, b2_ref, g_ref, be_ref,
                          out_ref, h1_ref, *, num_heads, head_dim, batch_tile):
    f32 = jnp.float32
    bf16 = jnp.bfloat16

    li = pl.program_id(1)
    n_layers = pl.num_programs(1)

    tb = batch_tile
    s = x_ref.shape[1]
    e = x_ref.shape[2]
    dd = wo_ref.shape[3]
    scale = 1.0 / math.sqrt(head_dim)

    # Init persistent FFN-hidden accumulator at the first layer step of this batch tile.
    @pl.when(li == 0)
    def _():
        h1_ref[...] = jnp.zeros_like(h1_ref)

    # Additive mask, computed ONCE per grid step (hoisted out of the N*H inner loops).
    addm = jnp.where(mask_ref[...] > 0, 0.0, -1e9).astype(f32)        # (TB, S, S)

    # Q/K/V projections on the (TB*S, E) row slab: fills the MXU M-dim.
    xb = x_ref[...].reshape(tb * s, e).astype(bf16)
    q = (jnp.dot(xb, wq_ref[0], preferred_element_type=f32) + bq_ref[0]) * scale
    k = jnp.dot(xb, wk_ref[0], preferred_element_type=f32) + bk_ref[0]
    v = jnp.dot(xb, wv_ref[0], preferred_element_type=f32) + bv_ref[0]
    # Cast to bf16 once per layer (not per head).
    qb = q.astype(bf16).reshape(tb, s, e)
    kb = k.astype(bf16).reshape(tb, s, e)
    vb = v.astype(bf16).reshape(tb, s, e)

    wo_l = wo_ref[0]                                                  # (H, dh, dd) bf16
    bo_l = bo_ref[0]                                                  # (1, dd)     f32
    w1_l = w1_ref[0]                                                  # (dd, d_hid) bf16

    for b in range(tb):                                               # static, TB small
        am = addm[b]                                                  # (S, S)
        out_b = jnp.zeros((s, dd), f32)
        for h in range(num_heads):                                    # static unroll
            lo = h * head_dim
            hi = lo + head_dim
            qh = qb[b, :, lo:hi]                                      # (S, dh) bf16
            kh = kb[b, :, lo:hi]
            vh = vb[b, :, lo:hi]
            # scores = qh @ kh^T (contract last dims; no materialized f32 transpose)
            sc = lax.dot_general(qh, kh, (((1,), (1,)), ((), ())),
                                 preferred_element_type=f32)          # (S, S)
            sc = sc + am
            sc = sc - jnp.max(sc, axis=-1, keepdims=True)
            p = jnp.exp(sc)
            p = p / jnp.sum(p, axis=-1, keepdims=True)                # exact softmax
            ctx = jnp.dot(p.astype(bf16), vh, preferred_element_type=f32)     # (S, dh)
            # concat(heads) @ Wo == sum_h ctx_h @ Wo_h : no lane concat needed.
            out_b = out_b + jnp.dot(ctx.astype(bf16), wo_l[h],
                                    preferred_element_type=f32)       # (S, dd)
        out_b = out_b + bo_l
        # FFN layer-1 is linear in the concat dim -> accumulate this layer's contribution
        # straight into the lane-dense hidden slab (no (S, N*dd) concat scratch).
        row = slice(b * s, (b + 1) * s)
        h1_ref[row, :] = h1_ref[row, :] + jnp.dot(out_b.astype(bf16), w1_l,
                                                  preferred_element_type=f32)

    # Final layer step: bias + ReLU + FFN layer-2 + LayerNorm + lane-dense store.
    @pl.when(li == n_layers - 1)
    def _():
        h1 = jnp.maximum(h1_ref[...] + b1_ref[...], 0.0)              # (TB*S, d_hid)
        y = jnp.dot(h1.astype(bf16), w2_ref[...],
                    preferred_element_type=f32) + b2_ref[...]         # (TB*S, d_out)
        mean = jnp.mean(y, axis=-1, keepdims=True)
        var = jnp.mean((y - mean) ** 2, axis=-1, keepdims=True)       # torch LN: biased var
        yn = (y - mean) * lax.rsqrt(var + 1e-5)
        yn = yn * g_ref[...] + be_ref[...]
        out_ref[...] = yn.reshape(out_ref.shape).astype(out_ref.dtype)


def _pick_batch_tile(b, s, target_rows=256):
    """Largest divisor of b with tile*s <= target_rows (fills the 128/256-tall MXU)."""
    tb = max(1, min(b, max(1, target_rows // max(s, 1))))
    while b % tb:
        tb -= 1
    return tb


def run_decoder_stack(x, mask, wq, bq, wk, bk, wv, bv, wo4, bo,
                      w1_3d, b1, w2, b2, gamma, beta, *, num_heads):
    """x: (B,S,E) f32; mask: (B,S,S); wq/wk/wv: (N,E,E) bf16; wo4: (N,H,dh,dd) bf16;
    w1_3d: (N,dd,d_hid) bf16; w2: (d_hid,d_out) bf16; biases/LN params f32.
    Returns (B, S, N*dd) f32."""
    b, s, e = x.shape
    n, hh, dh, dd = wo4.shape
    d_out = n * dd
    d_hid = w1_3d.shape[2]
    tb = _pick_batch_tile(b, s)

    kernel = functools.partial(_decoder_stack_kernel, num_heads=num_heads,
                               head_dim=dh, batch_tile=tb)

    return pl.pallas_call(
        kernel,
        out_shape=jax.ShapeDtypeStruct((b, s, d_out), x.dtype),
        grid_spec=pltpu.PrefetchScalarGridSpec(
            num_scalar_prefetch=0,
            grid=(b // tb, n),                                     # (batch tiles, layers)
            in_specs=[
                pl.BlockSpec((tb, s, e), lambda bi, li: (bi, 0, 0)),          # x (resident over li)
                pl.BlockSpec((tb, s, s), lambda bi, li: (bi, 0, 0)),          # mask (resident over li)
                pl.BlockSpec((1, e, e), lambda bi, li: (li, 0, 0)),           # Wq[li]  (streamed)
                pl.BlockSpec((1, 1, e), lambda bi, li: (li, 0, 0)),           # bq[li]
                pl.BlockSpec((1, e, e), lambda bi, li: (li, 0, 0)),           # Wk[li]
                pl.BlockSpec((1, 1, e), lambda bi, li: (li, 0, 0)),           # bk[li]
                pl.BlockSpec((1, e, e), lambda bi, li: (li, 0, 0)),           # Wv[li]
                pl.BlockSpec((1, 1, e), lambda bi, li: (li, 0, 0)),           # bv[li]
                pl.BlockSpec((1, hh, dh, dd), lambda bi, li: (li, 0, 0, 0)),  # Wo[li] per head
                pl.BlockSpec((1, 1, dd), lambda bi, li: (li, 0, 0)),          # bo[li]
                pl.BlockSpec((1, dd, d_hid), lambda bi, li: (li, 0, 0)),      # W1[li] row-slice
                pl.BlockSpec((1, d_hid), lambda bi, li: (0, 0)),              # FFN b1 (constant)
                pl.BlockSpec((d_hid, d_out), lambda bi, li: (0, 0)),          # FFN W2 (constant)
                pl.BlockSpec((1, d_out), lambda bi, li: (0, 0)),              # FFN b2
                pl.BlockSpec((1, d_out), lambda bi, li: (0, 0)),              # LN gamma
                pl.BlockSpec((1, d_out), lambda bi, li: (0, 0)),              # LN beta
            ],
            out_specs=pl.BlockSpec((tb, s, d_out), lambda bi, li: (bi, 0, 0)),
            # Persistent lane-dense FFN hidden accumulator (replaces the f32 concat slab).
            scratch_shapes=[pltpu.VMEM((tb * s, d_hid), jnp.float32)],
        ),
        compiler_params=pltpu.CompilerParams(
            dimension_semantics=("parallel", "arbitrary")),           # batch parallel, layers sequential
    )(x, mask, wq, bq, wk, bk, wv, bv, wo4, bo, w1_3d, b1, w2, b2, gamma, beta)


# -----------------------------------------------------------------------------
# DecoderStackLayer (Pallas) — parameters + forward glue + pure-JAX reference.
# -----------------------------------------------------------------------------
class DecoderStackLayerPallas:
    def __init__(self, embedding_dimension, number_of_layers, number_of_heads,
                 dropout_rate, max_sequence_length, stack_index, max_stack, key):
        self.E = embedding_dimension
        self.N = number_of_layers
        self.H = number_of_heads
        self.stack_index = stack_index
        self.max_stack = max_stack
        self.is_last = (stack_index == max_stack)
        self.decoder_dim1 = embedding_dimension // number_of_layers
        self.decoder_dim2 = (4 * embedding_dimension) // number_of_layers
        self.dd = self.decoder_dim2 if self.is_last else self.decoder_dim1

        E, N, dd = self.E, self.N, self.dd
        keys = jax.random.split(key, 14)
        scale = 0.02

        def w(k, shape):    # weights bf16 (MXU-native, halves weight DMA bytes)
            return (scale * jax.random.normal(k, shape)).astype(jnp.bfloat16)

        def b32(k, shape):  # biases / LN params stay f32
            return (scale * jax.random.normal(k, shape)).astype(jnp.float32)

        # Per-decoder-layer attention weights, stacked along the layer dim.
        self.wq = w(keys[0], (N, E, E)); self.bq = b32(keys[6], (N, 1, E))
        self.wk = w(keys[1], (N, E, E)); self.bk = b32(keys[7], (N, 1, E))
        self.wv = w(keys[2], (N, E, E)); self.bv = b32(keys[8], (N, 1, E))
        self.wo = w(keys[3], (N, E, dd)); self.bo = b32(keys[9], (N, 1, dd))

        if self.is_last:
            D, Dh = 4 * E, 16 * E            # feed_forward2 + normalize2_2
        else:
            D, Dh = E, 4 * E                 # feed_forward1 + normalize1
        self.D, self.Dh = D, Dh
        self.ff_w1 = w(keys[4], (D, Dh)); self.ff_b1 = b32(keys[10], (1, Dh))
        self.ff_w2 = w(keys[5], (Dh, D)); self.ff_b2 = b32(keys[11], (1, D))
        self.ln_gamma = (1.0 + 0.02 * jax.random.normal(keys[12], (1, D))).astype(jnp.float32)
        self.ln_beta = b32(keys[13], (1, D))

    def __call__(self, x, mask):
        # NOTE: original forward computes self.normalize2_1(x) when stack_index > 0 but
        # immediately discards the result (dead code) — intentionally omitted.
        dh = self.E // self.H
        wo4 = self.wo.reshape(self.N, self.H, dh, self.dd)      # host-side per-head split
        w1_3d = self.ff_w1.reshape(self.N, self.dd, self.Dh)    # host-side per-layer W1 slices
        return run_decoder_stack(x, mask, self.wq, self.bq, self.wk, self.bk,
                                 self.wv, self.bv, wo4, self.bo,
                                 w1_3d, self.ff_b1, self.ff_w2, self.ff_b2,
                                 self.ln_gamma, self.ln_beta, num_heads=self.H)

    # Pure-JAX reference (same bf16-input / f32-accumulate math) for correctness checking.
    def reference(self, x, mask):
        f32 = jnp.float32

        def q8(a):  # emulate bf16 MXU inputs with f32 accumulation
            return a.astype(jnp.bfloat16).astype(f32)

        dh = self.E // self.H
        scale = 1.0 / math.sqrt(dh)
        addm = jnp.where(mask > 0, 0.0, -1e9).astype(f32)
        xq = q8(x)
        outs = []
        for l in range(self.N):
            q = (xq @ self.wq[l].astype(f32) + self.bq[l]) * scale
            k = xq @ self.wk[l].astype(f32) + self.bk[l]
            v = xq @ self.wv[l].astype(f32) + self.bv[l]
            ctx_parts = []
            for h in range(self.H):
                lo, hi = h * dh, (h + 1) * dh
                s = jnp.einsum('bqd,bkd->bqk', q8(q[..., lo:hi]), q8(k[..., lo:hi])) + addm
                p = jax.nn.softmax(s, axis=-1)
                ctx_parts.append(jnp.einsum('bqk,bkd->bqd', q8(p), q8(v[..., lo:hi])))
            ctx = jnp.concatenate(ctx_parts, axis=-1)
            outs.append(q8(ctx) @ self.wo[l].astype(f32) + self.bo[l])
        cat = jnp.concatenate(outs, axis=2)
        h1 = jnp.maximum(q8(cat) @ self.ff_w1.astype(f32) + self.ff_b1, 0.0)
        y = q8(h1) @ self.ff_w2.astype(f32) + self.ff_b2
        mean = jnp.mean(y, axis=-1, keepdims=True)
        var = jnp.mean((y - mean) ** 2, axis=-1, keepdims=True)
        return (y - mean) * lax.rsqrt(var + 1e-5) * self.ln_gamma + self.ln_beta


if __name__ == "__main__":
    B, S, E = 2, 8, 32
    N_LAYERS, N_HEADS = 4, 4

    key = jax.random.PRNGKey(0)
    kx, kp1, kp2 = jax.random.split(key, 3)
    x = jax.random.normal(kx, (B, S, E), dtype=jnp.float32)
    # causal 0/1 mask, broadcast per batch
    mask = jnp.broadcast_to(jnp.tril(jnp.ones((S, S), jnp.float32)), (B, S, S))

    ok = True
    # Middle stack layer (stack_index != max_stack): output (B, S, E)
    layer_mid = DecoderStackLayerPallas(E, N_LAYERS, N_HEADS, 0.1, S,
                                        stack_index=0, max_stack=2, key=kp1)
    out_mid = jax.block_until_ready(layer_mid(x, mask))
    ref_mid = layer_mid.reference(x, mask)
    ok &= out_mid.shape == (B, S, E)
    ok &= bool(jnp.allclose(out_mid, ref_mid, rtol=2e-2, atol=2e-2))

    # Last stack layer (stack_index == max_stack): output (B, S, 4*E)
    layer_last = DecoderStackLayerPallas(E, N_LAYERS, N_HEADS, 0.1, S,
                                         stack_index=2, max_stack=2, key=kp2)
    out_last = jax.block_until_ready(layer_last(x, mask))
    ref_last = layer_last.reference(x, mask)
    ok &= out_last.shape == (B, S, 4 * E)
    ok &= bool(jnp.allclose(out_last, ref_last, rtol=2e-2, atol=2e-2))

    if ok:
        print("KERNEL_OK")
    else:
        print("MISMATCH")
</pallas_src>

<mosaic_0001>
module attributes {stable_mosaic.version = 11 : i64} {
  func.func @_decoder_stack_kernel(%arg0: i32, %arg1: i32, %arg2: memref<2x8x32xf32, #tpu.memory_space<vmem>>, %arg3: memref<2x8x8xf32, #tpu.memory_space<vmem>>, %arg4: memref<1x32x32xbf16, #tpu.memory_space<vmem>>, %arg5: memref<1x1x32xf32, #tpu.memory_space<vmem>>, %arg6: memref<1x32x32xbf16, #tpu.memory_space<vmem>>, %arg7: memref<1x1x32xf32, #tpu.memory_space<vmem>>, %arg8: memref<1x32x32xbf16, #tpu.memory_space<vmem>>, %arg9: memref<1x1x32xf32, #tpu.memory_space<vmem>>, %arg10: memref<1x4x8x8xbf16, #tpu.memory_space<vmem>>, %arg11: memref<1x1x8xf32, #tpu.memory_space<vmem>>, %arg12: memref<1x8x128xbf16, #tpu.memory_space<vmem>>, %arg13: memref<1x128xf32, #tpu.memory_space<vmem>>, %arg14: memref<128x32xbf16, #tpu.memory_space<vmem>>, %arg15: memref<1x32xf32, #tpu.memory_space<vmem>>, %arg16: memref<1x32xf32, #tpu.memory_space<vmem>>, %arg17: memref<1x32xf32, #tpu.memory_space<vmem>>, %arg18: memref<2x8x32xf32, #tpu.memory_space<vmem>>, %arg19: memref<16x128xf32, #tpu.memory_space<vmem>>) attributes {dimension_semantics = [#tpu.dimension_semantics<parallel>, #tpu.dimension_semantics<arbitrary>], iteration_bounds = array<i64: 1, 4>, scalar_prefetch = 0 : i64, scratch_operands = 1 : i64, tpu.core_type = #tpu.core_type<tc>, window_params = [{transform_indices = @transform_0, window_bounds = array<i64: 2, 8, 32>}, {transform_indices = @transform_1, window_bounds = array<i64: 2, 8, 8>}, {transform_indices = @transform_2, window_bounds = array<i64: 1, 32, 32>}, {transform_indices = @transform_3, window_bounds = array<i64: 1, 1, 32>}, {transform_indices = @transform_4, window_bounds = array<i64: 1, 32, 32>}, {transform_indices = @transform_5, window_bounds = array<i64: 1, 1, 32>}, {transform_indices = @transform_6, window_bounds = array<i64: 1, 32, 32>}, {transform_indices = @transform_7, window_bounds = array<i64: 1, 1, 32>}, {transform_indices = @transform_8, window_bounds = array<i64: 1, 4, 8, 8>}, {transform_indices = @transform_9, window_bounds = array<i64: 1, 1, 8>}, {transform_indices = @transform_10, window_bounds = array<i64: 1, 8, 128>}, {pipeline_mode = #tpu.pipeline_mode<synchronous>, transform_indices = @transform_11, window_bounds = array<i64: 1, 128>}, {pipeline_mode = #tpu.pipeline_mode<synchronous>, transform_indices = @transform_12, window_bounds = array<i64: 128, 32>}, {pipeline_mode = #tpu.pipeline_mode<synchronous>, transform_indices = @transform_13, window_bounds = array<i64: 1, 32>}, {pipeline_mode = #tpu.pipeline_mode<synchronous>, transform_indices = @transform_14, window_bounds = array<i64: 1, 32>}, {pipeline_mode = #tpu.pipeline_mode<synchronous>, transform_indices = @transform_15, window_bounds = array<i64: 1, 32>}, {transform_indices = @transform_16, window_bounds = array<i64: 2, 8, 32>}]} {
    %c0_i32 = arith.constant 0 : i32
    %0 = arith.cmpi eq, %arg1, %c0_i32 : i32
    %1 = arith.extui %0 : i1 to i32
    %c0_i32_0 = arith.constant 0 : i32
    %2 = arith.cmpi ne, %1, %c0_i32_0 : i32
    scf.if %2 {
      %cst_92 = arith.constant 0.000000e+00 : f32
      %262 = vector.broadcast %cst_92 : f32 to vector<16x128xf32>
      %c0_93 = arith.constant 0 : index
      %c0_94 = arith.constant 0 : index
      %263 = vector.load %arg19[%c0_93, %c0_94] : memref<16x128xf32, #tpu.memory_space<vmem>>, vector<16x128xf32>
      tpu.vector_store %arg19[%c0_93, %c0_94], %262 {strides = array<i32>} : memref<16x128xf32, #tpu.memory_space<vmem>>, vector<16x128xf32>,
    } else {
    }
    %c0 = arith.constant 0 : index
    %c0_1 = arith.constant 0 : index
    %c0_2 = arith.constant 0 : index
    %3 = vector.load %arg3[%c0, %c0_1, %c0_2] : memref<2x8x8xf32, #tpu.memory_space<vmem>>, vector<2x8x8xf32>
    %cst = arith.constant 0.000000e+00 : f32
    %4 = vector.broadcast %cst : f32 to vector<2x8x8xf32>
    %5 = arith.cmpf ogt, %3, %4 : vector<2x8x8xf32>
    %cst_3 = arith.constant 0.000000e+00 : f32
    %cst_4 = arith.constant -1.000000e+09 : f32
    %6 = vector.broadcast %cst_3 : f32 to vector<2x8x8xf32>
    %7 = vector.broadcast %cst_4 : f32 to vector<2x8x8xf32>
    %8 = arith.select %5, %6, %7 : vector<2x8x8xi1>, vector<2x8x8xf32>
    %c0_5 = arith.constant 0 : index
    %c0_6 = arith.constant 0 : index
    %c0_7 = arith.constant 0 : index
    %9 = vector.load %arg2[%c0_5, %c0_6, %c0_7] : memref<2x8x32xf32, #tpu.memory_space<vmem>>, vector<2x8x32xf32>
    %10 = vector.shape_cast %9 : vector<2x8x32xf32> to vector<16x32xf32>
    %11 = arith.truncf %10 : vector<16x32xf32> to vector<16x32xbf16>
    %c0_8 = arith.constant 0 : index
    %c0_9 = arith.constant 0 : index
    %c0_10 = arith.constant 0 : index
    %12 = vector.load %arg4[%c0_8, %c0_9, %c0_10] : memref<1x32x32xbf16, #tpu.memory_space<vmem>>, vector<1x32x32xbf16>
    %13 = vector.shape_cast %12 : vector<1x32x32xbf16> to vector<32x32xbf16>
    %cst_11 = arith.constant dense<0.000000e+00> : vector<16x32xf32>
    %14 = tpu.matmul %11, %13, %cst_11 {dimension_numbers = #tpu.dot_dimension_numbers<[1], [0], [0], [1], [0, 0, 1, 1], [], []>} : vector<16x32xbf16>, vector<32x32xbf16>, vector<16x32xf32> -> vector<16x32xf32>
    %c0_12 = arith.constant 0 : index
    %c0_13 = arith.constant 0 : index
    %c0_14 = arith.constant 0 : index
    %15 = vector.load %arg5[%c0_12, %c0_13, %c0_14] : memref<1x1x32xf32, #tpu.memory_space<vmem>>, vector<1x1x32xf32>
    %16 = vector.shape_cast %15 : vector<1x1x32xf32> to vector<1x32xf32>
    %17 = vector.broadcast %16 : vector<1x32xf32> to vector<16x32xf32>
    %18 = arith.addf %14, %17 : vector<16x32xf32>
    %cst_15 = arith.constant 0.353553385 : f32
    %19 = vector.broadcast %cst_15 : f32 to vector<16x32xf32>
    %20 = arith.mulf %18, %19 : vector<16x32xf32>
    %c0_16 = arith.constant 0 : index
    %c0_17 = arith.constant 0 : index
    %c0_18 = arith.constant 0 : index
    %21 = vector.load %arg6[%c0_16, %c0_17, %c0_18] : memref<1x32x32xbf16, #tpu.memory_space<vmem>>, vector<1x32x32xbf16>
    %22 = vector.shape_cast %21 : vector<1x32x32xbf16> to vector<32x32xbf16>
    %cst_19 = arith.constant dense<0.000000e+00> : vector<16x32xf32>
    %23 = tpu.matmul %11, %22, %cst_19 {dimension_numbers = #tpu.dot_dimension_numbers<[1], [0], [0], [1], [0, 0, 1, 1], [], []>} : vector<16x32xbf16>, vector<32x32xbf16>, vector<16x32xf32> -> vector<16x32xf32>
    %c0_20 = arith.constant 0 : index
    %c0_21 = arith.constant 0 : index
    %c0_22 = arith.constant 0 : index
    %24 = vector.load %arg7[%c0_20, %c0_21, %c0_22] : memref<1x1x32xf32, #tpu.memory_space<vmem>>, vector<1x1x32xf32>
    %25 = vector.shape_cast %24 : vector<1x1x32xf32> to vector<1x32xf32>
    %26 = vector.broadcast %25 : vector<1x32xf32> to vector<16x32xf32>
    %27 = arith.addf %23, %26 : vector<16x32xf32>
    %c0_23 = arith.constant 0 : index
    %c0_24 = arith.constant 0 : index
    %c0_25 = arith.constant 0 : index
    %28 = vector.load %arg8[%c0_23, %c0_24, %c0_25] : memref<1x32x32xbf16, #tpu.memory_space<vmem>>, vector<1x32x32xbf16>
    %29 = vector.shape_cast %28 : vector<1x32x32xbf16> to vector<32x32xbf16>
    %cst_26 = arith.constant dense<0.000000e+00> : vector<16x32xf32>
    %30 = tpu.matmul %11, %29, %cst_26 {dimension_numbers = #tpu.dot_dimension_numbers<[1], [0], [0], [1], [0, 0, 1, 1], [], []>} : vector<16x32xbf16>, vector<32x32xbf16>, vector<16x32xf32> -> vector<16x32xf32>
    %c0_27 = arith.constant 0 : index
    %c0_28 = arith.constant 0 : index
    %c0_29 = arith.constant 0 : index
    %31 = vector.load %arg9[%c0_27, %c0_28, %c0_29] : memref<1x1x32xf32, #tpu.memory_space<vmem>>, vector<1x1x32xf32>
    %32 = vector.shape_cast %31 : vector<1x1x32xf32> to vector<1x32xf32>
    %33 = vector.broadcast %32 : vector<1x32xf32> to vector<16x32xf32>
    %34 = arith.addf %30, %33 : vector<16x32xf32>
    %35 = arith.truncf %20 : vector<16x32xf32> to vector<16x32xbf16>
    %36 = vector.shape_cast %35 : vector<16x32xbf16> to vector<2x8x32xbf16>
    %37 = arith.truncf %27 : vector<16x32xf32> to vector<16x32xbf16>
    %38 = vector.shape_cast %37 : vector<16x32xbf16> to vector<2x8x32xbf16>
    %39 = arith.truncf %34 : vector<16x32xf32> to vector<16x32xbf16>
    %40 = vector.shape_cast %39 : vector<16x32xbf16> to vector<2x8x32xbf16>
    %c0_30 = arith.constant 0 : index
    %c0_31 = arith.constant 0 : index
    %c0_32 = arith.constant 0 : index
    %c0_33 = arith.constant 0 : index
    %41 = vector.load %arg10[%c0_30, %c0_31, %c0_32, %c0_33] : memref<1x4x8x8xbf16, #tpu.memory_space<vmem>>, vector<1x4x8x8xbf16>
    %42 = vector.shape_cast %41 : vector<1x4x8x8xbf16> to vector<4x8x8xbf16>
    %c0_34 = arith.constant 0 : index
    %c0_35 = arith.constant 0 : index
    %c0_36 = arith.constant 0 : index
    %43 = vector.load %arg11[%c0_34, %c0_35, %c0_36] : memref<1x1x8xf32, #tpu.memory_space<vmem>>, vector<1x1x8xf32>
    %44 = vector.shape_cast %43 : vector<1x1x8xf32> to vector<1x8xf32>
    %c0_37 = arith.constant 0 : index
    %c0_38 = arith.constant 0 : index
    %c0_39 = arith.constant 0 : index
    %45 = vector.load %arg12[%c0_37, %c0_38, %c0_39] : memref<1x8x128xbf16, #tpu.memory_space<vmem>>, vector<1x8x128xbf16>
    %46 = vector.shape_cast %45 : vector<1x8x128xbf16> to vector<8x128xbf16>
    %47 = vector.extract_strided_slice %8 {offsets = [0, 0, 0], sizes = [1, 8, 8], strides = [1, 1, 1]} : vector<2x8x8xf32> to vector<1x8x8xf32>
    %48 = vector.shape_cast %47 : vector<1x8x8xf32> to vector<8x8xf32>
    %cst_40 = arith.constant 0.000000e+00 : f32
    %49 = vector.broadcast %cst_40 : f32 to vector<8x8xf32>
    %50 = vector.extract_strided_slice %36 {offsets = [0, 0, 0], sizes = [1, 8, 8], strides = [1, 1, 1]} : vector<2x8x32xbf16> to vector<1x8x8xbf16>
    %51 = vector.shape_cast %50 : vector<1x8x8xbf16> to vector<8x8xbf16>
    %52 = vector.extract_strided_slice %38 {offsets = [0, 0, 0], sizes = [1, 8, 8], strides = [1, 1, 1]} : vector<2x8x32xbf16> to vector<1x8x8xbf16>
    %53 = vector.shape_cast %52 : vector<1x8x8xbf16> to vector<8x8xbf16>
    %54 = vector.extract_strided_slice %40 {offsets = [0, 0, 0], sizes = [1, 8, 8], strides = [1, 1, 1]} : vector<2x8x32xbf16> to vector<1x8x8xbf16>
    %55 = vector.shape_cast %54 : vector<1x8x8xbf16> to vector<8x8xbf16>
    %cst_41 = arith.constant dense<0.000000e+00> : vector<8x8xf32>
    %56 = tpu.matmul %51, %53, %cst_41 {dimension_numbers = #tpu.dot_dimension_numbers<[1], [1], [0], [0], [0, 0, 1, 0], [], []>} : vector<8x8xbf16>, vector<8x8xbf16>, vector<8x8xf32> -> vector<8x8xf32>
    %57 = arith.addf %56, %48 : vector<8x8xf32>
    %cst_42 = arith.constant dense<0xFF800000> : vector<8xf32>
    %58 = vector.multi_reduction <maximumf>, %57, %cst_42 [1] : vector<8x8xf32> to vector<8xf32>
    %59 = vector.shape_cast %58 : vector<8xf32> to vector<8x1xf32>
    %60 = vector.broadcast %59 : vector<8x1xf32> to vector<8x8xf32>
    %61 = arith.subf %57, %60 : vector<8x8xf32>
    %62 = math.exp %61 : vector<8x8xf32>
    %cst_43 = arith.constant dense<0.000000e+00> : vector<8xf32>
    %63 = vector.multi_reduction <add>, %62, %cst_43 [1] : vector<8x8xf32> to vector<8xf32>
    %64 = vector.shape_cast %63 : vector<8xf32> to vector<8x1xf32>
    %65 = vector.broadcast %64 : vector<8x1xf32> to vector<8x8xf32>
    %66 = arith.divf %62, %65 : vector<8x8xf32>
    %67 = arith.truncf %66 : vector<8x8xf32> to vector<8x8xbf16>
    %cst_44 = arith.constant dense<0.000000e+00> : vector<8x8xf32>
    %68 = tpu.matmul %67, %55, %cst_44 {dimension_numbers = #tpu.dot_dimension_numbers<[1], [0], [0], [1], [0, 0, 1, 1], [], []>} : vector<8x8xbf16>, vector<8x8xbf16>, vector<8x8xf32> -> vector<8x8xf32>
    %69 = arith.truncf %68 : vector<8x8xf32> to vector<8x8xbf16>
    %70 = vector.extract_strided_slice %42 {offsets = [0, 0, 0], sizes = [1, 8, 8], strides = [1, 1, 1]} : vector<4x8x8xbf16> to vector<1x8x8xbf16>
    %71 = vector.shape_cast %70 : vector<1x8x8xbf16> to vector<8x8xbf16>
    %cst_45 = arith.constant dense<0.000000e+00> : vector<8x8xf32>
    %72 = tpu.matmul %69, %71, %cst_45 {dimension_numbers = #tpu.dot_dimension_numbers<[1], [0], [0], [1], [0, 0, 1, 1], [], []>} : vector<8x8xbf16>, vector<8x8xbf16>, vector<8x8xf32> -> vector<8x8xf32>
    %73 = arith.addf %49, %72 : vector<8x8xf32>
    %74 = vector.extract_strided_slice %36 {offsets = [0, 0, 8], sizes = [1, 8, 8], strides = [1, 1, 1]} : vector<2x8x32xbf16> to vector<1x8x8xbf16>
    %75 = vector.shape_cast %74 : vector<1x8x8xbf16> to vector<8x8xbf16>
    %76 = vector.extract_strided_slice %38 {offsets = [0, 0, 8], sizes = [1, 8, 8], strides = [1, 1, 1]} : vector<2x8x32xbf16> to vector<1x8x8xbf16>
    %77 = vector.shape_cast %76 : vector<1x8x8xbf16> to vector<8x8xbf16>
    %78 = vector.extract_strided_slice %40 {offsets = [0, 0, 8], sizes = [1, 8, 8], strides = [1, 1, 1]} : vector<2x8x32xbf16> to vector<1x8x8xbf16>
    %79 = vector.shape_cast %78 : vector<1x8x8xbf16> to vector<8x8xbf16>
    %cst_46 = arith.constant dense<0.000000e+00> : vector<8x8xf32>
    %80 = tpu.matmul %75, %77, %cst_46 {dimension_numbers = #tpu.dot_dimension_numbers<[1], [1], [0], [0], [0, 0, 1, 0], [], []>} : vector<8x8xbf16>, vector<8x8xbf16>, vector<8x8xf32> -> vector<8x8xf32>
    %81 = arith.addf %80, %48 : vector<8x8xf32>
    %cst_47 = arith.constant dense<0xFF800000> : vector<8xf32>
    %82 = vector.multi_reduction <maximumf>, %81, %cst_47 [1] : vector<8x8xf32> to vector<8xf32>
    %83 = vector.shape_cast %82 : vector<8xf32> to vector<8x1xf32>
    %84 = vector.broadcast %83 : vector<8x1xf32> to vector<8x8xf32>
    %85 = arith.subf %81, %84 : vector<8x8xf32>
    %86 = math.exp %85 : vector<8x8xf32>
    %cst_48 = arith.constant dense<0.000000e+00> : vector<8xf32>
    %87 = vector.multi_reduction <add>, %86, %cst_48 [1] : vector<8x8xf32> to vector<8xf32>
    %88 = vector.shape_cast %87 : vector<8xf32> to vector<8x1xf32>
    %89 = vector.broadcast %88 : vector<8x1xf32> to vector<8x8xf32>
    %90 = arith.divf %86, %89 : vector<8x8xf32>
    %91 = arith.truncf %90 : vector<8x8xf32> to vector<8x8xbf16>
    %cst_49 = arith.constant dense<0.000000e+00> : vector<8x8xf32>
    %92 = tpu.matmul %91, %79, %cst_49 {dimension_numbers = #tpu.dot_dimension_numbers<[1], [0], [0], [1], [0, 0, 1, 1], [], []>} : vector<8x8xbf16>, vector<8x8xbf16>, vector<8x8xf32> -> vector<8x8xf32>
    %93 = arith.truncf %92 : vector<8x8xf32> to vector<8x8xbf16>
    %94 = vector.extract_strided_slice %42 {offsets = [1, 0, 0], sizes = [1, 8, 8], strides = [1, 1, 1]} : vector<4x8x8xbf16> to vector<1x8x8xbf16>
    %95 = vector.shape_cast %94 : vector<1x8x8xbf16> to vector<8x8xbf16>
    %cst_50 = arith.constant dense<0.000000e+00> : vector<8x8xf32>
    %96 = tpu.matmul %93, %95, %cst_50 {dimension_numbers = #tpu.dot_dimension_numbers<[1], [0], [0], [1], [0, 0, 1, 1], [], []>} : vector<8x8xbf16>, vector<8x8xbf16>, vector<8x8xf32> -> vector<8x8xf32>
    %97 = arith.addf %73, %96 : vector<8x8xf32>
    %98 = vector.extract_strided_slice %36 {offsets = [0, 0, 16], sizes = [1, 8, 8], strides = [1, 1, 1]} : vector<2x8x32xbf16> to vector<1x8x8xbf16>
    %99 = vector.shape_cast %98 : vector<1x8x8xbf16> to vector<8x8xbf16>
    %100 = vector.extract_strided_slice %38 {offsets = [0, 0, 16], sizes = [1, 8, 8], strides = [1, 1, 1]} : vector<2x8x32xbf16> to vector<1x8x8xbf16>
    %101 = vector.shape_cast %100 : vector<1x8x8xbf16> to vector<8x8xbf16>
    %102 = vector.extract_strided_slice %40 {offsets = [0, 0, 16], sizes = [1, 8, 8], strides = [1, 1, 1]} : vector<2x8x32xbf16> to vector<1x8x8xbf16>
    %103 = vector.shape_cast %102 : vector<1x8x8xbf16> to vector<8x8xbf16>
    %cst_51 = arith.constant dense<0.000000e+00> : vector<8x8xf32>
    %104 = tpu.matmul %99, %101, %cst_51 {dimension_numbers = #tpu.dot_dimension_numbers<[1], [1], [0], [0], [0, 0, 1, 0], [], []>} : vector<8x8xbf16>, vector<8x8xbf16>, vector<8x8xf32> -> vector<8x8xf32>
    %105 = arith.addf %104, %48 : vector<8x8xf32>
    %cst_52 = arith.constant dense<0xFF800000> : vector<8xf32>
    %106 = vector.multi_reduction <maximumf>, %105, %cst_52 [1] : vector<8x8xf32> to vector<8xf32>
    %107 = vector.shape_cast %106 : vector<8xf32> to vector<8x1xf32>
    %108 = vector.broadcast %107 : vector<8x1xf32> to vector<8x8xf32>
    %109 = arith.subf %105, %108 : vector<8x8xf32>
    %110 = math.exp %109 : vector<8x8xf32>
    %cst_53 = arith.constant dense<0.000000e+00> : vector<8xf32>
    %111 = vector.multi_reduction <add>, %110, %cst_53 [1] : vector<8x8xf32> to vector<8xf32>
    %112 = vector.shape_cast %111 : vector<8xf32> to vector<8x1xf32>
    %113 = vector.broadcast %112 : vector<8x1xf32> to vector<8x8xf32>
    %114 = arith.divf %110, %113 : vector<8x8xf32>
    %115 = arith.truncf %114 : vector<8x8xf32> to vector<8x8xbf16>
    %cst_54 = arith.constant dense<0.000000e+00> : vector<8x8xf32>
    %116 = tpu.matmul %115, %103, %cst_54 {dimension_numbers = #tpu.dot_dimension_numbers<[1], [0], [0], [1], [0, 0, 1, 1], [], []>} : vector<8x8xbf16>, vector<8x8xbf16>, vector<8x8xf32> -> vector<8x8xf32>
    %117 = arith.truncf %116 : vector<8x8xf32> to vector<8x8xbf16>
    %118 = vector.extract_strided_slice %42 {offsets = [2, 0, 0], sizes = [1, 8, 8], strides = [1, 1, 1]} : vector<4x8x8xbf16> to vector<1x8x8xbf16>
    %119 = vector.shape_cast %118 : vector<1x8x8xbf16> to vector<8x8xbf16>
    %cst_55 = arith.constant dense<0.000000e+00> : vector<8x8xf32>
    %120 = tpu.matmul %117, %119, %cst_55 {dimension_numbers = #tpu.dot_dimension_numbers<[1], [0], [0], [1], [0, 0, 1, 1], [], []>} : vector<8x8xbf16>, vector<8x8xbf16>, vector<8x8xf32> -> vector<8x8xf32>
    %121 = arith.addf %97, %120 : vector<8x8xf32>
    %122 = vector.extract_strided_slice %36 {offsets = [0, 0, 24], sizes = [1, 8, 8], strides = [1, 1, 1]} : vector<2x8x32xbf16> to vector<1x8x8xbf16>
    %123 = vector.shape_cast %122 : vector<1x8x8xbf16> to vector<8x8xbf16>
    %124 = vector.extract_strided_slice %38 {offsets = [0, 0, 24], sizes = [1, 8, 8], strides = [1, 1, 1]} : vector<2x8x32xbf16> to vector<1x8x8xbf16>
    %125 = vector.shape_cast %124 : vector<1x8x8xbf16> to vector<8x8xbf16>
    %126 = vector.extract_strided_slice %40 {offsets = [0, 0, 24], sizes = [1, 8, 8], strides = [1, 1, 1]} : vector<2x8x32xbf16> to vector<1x8x8xbf16>
    %127 = vector.shape_cast %126 : vector<1x8x8xbf16> to vector<8x8xbf16>
    %cst_56 = arith.constant dense<0.000000e+00> : vector<8x8xf32>
    %128 = tpu.matmul %123, %125, %cst_56 {dimension_numbers = #tpu.dot_dimension_numbers<[1], [1], [0], [0], [0, 0, 1, 0], [], []>} : vector<8x8xbf16>, vector<8x8xbf16>, vector<8x8xf32> -> vector<8x8xf32>
    %129 = arith.addf %128, %48 : vector<8x8xf32>
    %cst_57 = arith.constant dense<0xFF800000> : vector<8xf32>
    %130 = vector.multi_reduction <maximumf>, %129, %cst_57 [1] : vector<8x8xf32> to vector<8xf32>
    %131 = vector.shape_cast %130 : vector<8xf32> to vector<8x1xf32>
    %132 = vector.broadcast %131 : vector<8x1xf32> to vector<8x8xf32>
    %133 = arith.subf %129, %132 : vector<8x8xf32>
    %134 = math.exp %133 : vector<8x8xf32>
    %cst_58 = arith.constant dense<0.000000e+00> : vector<8xf32>
    %135 = vector.multi_reduction <add>, %134, %cst_58 [1] : vector<8x8xf32> to vector<8xf32>
    %136 = vector.shape_cast %135 : vector<8xf32> to vector<8x1xf32>
    %137 = vector.broadcast %136 : vector<8x1xf32> to vector<8x8xf32>
    %138 = arith.divf %134, %137 : vector<8x8xf32>
    %139 = arith.truncf %138 : vector<8x8xf32> to vector<8x8xbf16>
    %cst_59 = arith.constant dense<0.000000e+00> : vector<8x8xf32>
    %140 = tpu.matmul %139, %127, %cst_59 {dimension_numbers = #tpu.dot_dimension_numbers<[1], [0], [0], [1], [0, 0, 1, 1], [], []>} : vector<8x8xbf16>, vector<8x8xbf16>, vector<8x8xf32> -> vector<8x8xf32>
    %141 = arith.truncf %140 : vector<8x8xf32> to vector<8x8xbf16>
    %142 = vector.extract_strided_slice %42 {offsets = [3, 0, 0], sizes = [1, 8, 8], strides = [1, 1, 1]} : vector<4x8x8xbf16> to vector<1x8x8xbf16>
    %143 = vector.shape_cast %142 : vector<1x8x8xbf16> to vector<8x8xbf16>
    %cst_60 = arith.constant dense<0.000000e+00> : vector<8x8xf32>
    %144 = tpu.matmul %141, %143, %cst_60 {dimension_numbers = #tpu.dot_dimension_numbers<[1], [0], [0], [1], [0, 0, 1, 1], [], []>} : vector<8x8xbf16>, vector<8x8xbf16>, vector<8x8xf32> -> vector<8x8xf32>
    %145 = arith.addf %121, %144 : vector<8x8xf32>
    %146 = vector.broadcast %44 : vector<1x8xf32> to vector<8x8xf32>
    %147 = arith.addf %145, %146 : vector<8x8xf32>
    %c0_61 = arith.constant 0 : index
    %c0_62 = arith.constant 0 : index
    %148 = vector.load %arg19[%c0_61, %c0_62] : memref<16x128xf32, #tpu.memory_space<vmem>>, vector<8x128xf32>
    %149 = arith.truncf %147 : vector<8x8xf32> to vector<8x8xbf16>
    %cst_63 = arith.constant dense<0.000000e+00> : vector<8x128xf32>
    %150 = tpu.matmul %149, %46, %cst_63 {dimension_numbers = #tpu.dot_dimension_numbers<[1], [0], [0], [1], [0, 0, 1, 1], [], []>} : vector<8x8xbf16>, vector<8x128xbf16>, vector<8x128xf32> -> vector<8x128xf32>
    %151 = arith.addf %148, %150 : vector<8x128xf32>
    %c0_64 = arith.constant 0 : index
    %c0_65 = arith.constant 0 : index
    %152 = vector.load %arg19[%c0_64, %c0_65] : memref<16x128xf32, #tpu.memory_space<vmem>>, vector<8x128xf32>
    tpu.vector_store %arg19[%c0_64, %c0_65], %151 {strides = array<i32>} : memref<16x128xf32, #tpu.memory_space<vmem>>, vector<8x128xf32>,
    %153 = vector.extract_strided_slice %8 {offsets = [1, 0, 0], sizes = [1, 8, 8], strides = [1, 1, 1]} : vector<2x8x8xf32> to vector<1x8x8xf32>
    %154 = vector.shape_cast %153 : vector<1x8x8xf32> to vector<8x8xf32>
    %cst_66 = arith.constant 0.000000e+00 : f32
    %155 = vector.broadcast %cst_66 : f32 to vector<8x8xf32>
    %156 = vector.extract_strided_slice %36 {offsets = [1, 0, 0], sizes = [1, 8, 8], strides = [1, 1, 1]} : vector<2x8x32xbf16> to vector<1x8x8xbf16>
    %157 = vector.shape_cast %156 : vector<1x8x8xbf16> to vector<8x8xbf16>
    %158 = vector.extract_strided_slice %38 {offsets = [1, 0, 0], sizes = [1, 8, 8], strides = [1, 1, 1]} : vector<2x8x32xbf16> to vector<1x8x8xbf16>
    %159 = vector.shape_cast %158 : vector<1x8x8xbf16> to vector<8x8xbf16>
    %160 = vector.extract_strided_slice %40 {offsets = [1, 0, 0], sizes = [1, 8, 8], strides = [1, 1, 1]} : vector<2x8x32xbf16> to vector<1x8x8xbf16>
    %161 = vector.shape_cast %160 : vector<1x8x8xbf16> to vector<8x8xbf16>
    %cst_67 = arith.constant dense<0.000000e+00> : vector<8x8xf32>
    %162 = tpu.matmul %157, %159, %cst_67 {dimension_numbers = #tpu.dot_dimension_numbers<[1], [1], [0], [0], [0, 0, 1, 0], [], []>} : vector<8x8xbf16>, vector<8x8xbf16>, vector<8x8xf32> -> vector<8x8xf32>
    %163 = arith.addf %162, %154 : vector<8x8xf32>
    %cst_68 = arith.constant dense<0xFF800000> : vector<8xf32>
    %164 = vector.multi_reduction <maximumf>, %163, %cst_68 [1] : vector<8x8xf32> to vector<8xf32>
    %165 = vector.shape_cast %164 : vector<8xf32> to vector<8x1xf32>
    %166 = vector.broadcast %165 : vector<8x1xf32> to vector<8x8xf32>
    %167 = arith.subf %163, %166 : vector<8x8xf32>
    %168 = math.exp %167 : vector<8x8xf32>
    %cst_69 = arith.constant dense<0.000000e+00> : vector<8xf32>
    %169 = vector.multi_reduction <add>, %168, %cst_69 [1] : vector<8x8xf32> to vector<8xf32>
    %170 = vector.shape_cast %169 : vector<8xf32> to vector<8x1xf32>
    %171 = vector.broadcast %170 : vector<8x1xf32> to vector<8x8xf32>
    %172 = arith.divf %168, %171 : vector<8x8xf32>
    %173 = arith.truncf %172 : vector<8x8xf32> to vector<8x8xbf16>
    %cst_70 = arith.constant dense<0.000000e+00> : vector<8x8xf32>
    %174 = tpu.matmul %173, %161, %cst_70 {dimension_numbers = #tpu.dot_dimension_numbers<[1], [0], [0], [1], [0, 0, 1, 1], [], []>} : vector<8x8xbf16>, vector<8x8xbf16>, vector<8x8xf32> -> vector<8x8xf32>
    %175 = arith.truncf %174 : vector<8x8xf32> to vector<8x8xbf16>
    %176 = vector.extract_strided_slice %42 {offsets = [0, 0, 0], sizes = [1, 8, 8], strides = [1, 1, 1]} : vector<4x8x8xbf16> to vector<1x8x8xbf16>
    %177 = vector.shape_cast %176 : vector<1x8x8xbf16> to vector<8x8xbf16>
    %cst_71 = arith.constant dense<0.000000e+00> : vector<8x8xf32>
    %178 = tpu.matmul %175, %177, %cst_71 {dimension_numbers = #tpu.dot_dimension_numbers<[1], [0], [0], [1], [0, 0, 1, 1], [], []>} : vector<8x8xbf16>, vector<8x8xbf16>, vector<8x8xf32> -> vector<8x8xf32>
    %179 = arith.addf %155, %178 : vector<8x8xf32>
    %180 = vector.extract_strided_slice %36 {offsets = [1, 0, 8], sizes = [1, 8, 8], strides = [1, 1, 1]} : vector<2x8x32xbf16> to vector<1x8x8xbf16>
    %181 = vector.shape_cast %180 : vector<1x8x8xbf16> to vector<8x8xbf16>
    %182 = vector.extract_strided_slice %38 {offsets = [1, 0, 8], sizes = [1, 8, 8], strides = [1, 1, 1]} : vector<2x8x32xbf16> to vector<1x8x8xbf16>
    %183 = vector.shape_cast %182 : vector<1x8x8xbf16> to vector<8x8xbf16>
    %184 = vector.extract_strided_slice %40 {offsets = [1, 0, 8], sizes = [1, 8, 8], strides = [1, 1, 1]} : vector<2x8x32xbf16> to vector<1x8x8xbf16>
    %185 = vector.shape_cast %184 : vector<1x8x8xbf16> to vector<8x8xbf16>
    %cst_72 = arith.constant dense<0.000000e+00> : vector<8x8xf32>
    %186 = tpu.matmul %181, %183, %cst_72 {dimension_numbers = #tpu.dot_dimension_numbers<[1], [1], [0], [0], [0, 0, 1, 0], [], []>} : vector<8x8xbf16>, vector<8x8xbf16>, vector<8x8xf32> -> vector<8x8xf32>
    %187 = arith.addf %186, %154 : vector<8x8xf32>
    %cst_73 = arith.constant dense<0xFF800000> : vector<8xf32>
    %188 = vector.multi_reduction <maximumf>, %187, %cst_73 [1] : vector<8x8xf32> to vector<8xf32>
    %189 = vector.shape_cast %188 : vector<8xf32> to vector<8x1xf32>
    %190 = vector.broadcast %189 : vector<8x1xf32> to vector<8x8xf32>
    %191 = arith.subf %187, %190 : vector<8x8xf32>
    %192 = math.exp %191 : vector<8x8xf32>
    %cst_74 = arith.constant dense<0.000000e+00> : vector<8xf32>
    %193 = vector.multi_reduction <add>, %192, %cst_74 [1] : vector<8x8xf32> to vector<8xf32>
    %194 = vector.shape_cast %193 : vector<8xf32> to vector<8x1xf32>
    %195 = vector.broadcast %194 : vector<8x1xf32> to vector<8x8xf32>
    %196 = arith.divf %192, %195 : vector<8x8xf32>
    %197 = arith.truncf %196 : vector<8x8xf32> to vector<8x8xbf16>
    %cst_75 = arith.constant dense<0.000000e+00> : vector<8x8xf32>
    %198 = tpu.matmul %197, %185, %cst_75 {dimension_numbers = #tpu.dot_dimension_numbers<[1], [0], [0], [1], [0, 0, 1, 1], [], []>} : vector<8x8xbf16>, vector<8x8xbf16>, vector<8x8xf32> -> vector<8x8xf32>
    %199 = arith.truncf %198 : vector<8x8xf32> to vector<8x8xbf16>
    %200 = vector.extract_strided_slice %42 {offsets = [1, 0, 0], sizes = [1, 8, 8], strides = [1, 1, 1]} : vector<4x8x8xbf16> to vector<1x8x8xbf16>
    %201 = vector.shape_cast %200 : vector<1x8x8xbf16> to vector<8x8xbf16>
    %cst_76 = arith.constant dense<0.000000e+00> : vector<8x8xf32>
    %202 = tpu.matmul %199, %201, %cst_76 {dimension_numbers = #tpu.dot_dimension_numbers<[1], [0], [0], [1], [0, 0, 1, 1], [], []>} : vector<8x8xbf16>, vector<8x8xbf16>, vector<8x8xf32> -> vector<8x8xf32>
    %203 = arith.addf %179, %202 : vector<8x8xf32>
    %204 = vector.extract_strided_slice %36 {offsets = [1, 0, 16], sizes = [1, 8, 8], strides = [1, 1, 1]} : vector<2x8x32xbf16> to vector<1x8x8xbf16>
    %205 = vector.shape_cast %204 : vector<1x8x8xbf16> to vector<8x8xbf16>
    %206 = vector.extract_strided_slice %38 {offsets = [1, 0, 16], sizes = [1, 8, 8], strides = [1, 1, 1]} : vector<2x8x32xbf16> to vector<1x8x8xbf16>
    %207 = vector.shape_cast %206 : vector<1x8x8xbf16> to vector<8x8xbf16>
    %208 = vector.extract_strided_slice %40 {offsets = [1, 0, 16], sizes = [1, 8, 8], strides = [1, 1, 1]} : vector<2x8x32xbf16> to vector<1x8x8xbf16>
    %209 = vector.shape_cast %208 : vector<1x8x8xbf16> to vector<8x8xbf16>
    %cst_77 = arith.constant dense<0.000000e+00> : vector<8x8xf32>
    %210 = tpu.matmul %205, %207, %cst_77 {dimension_numbers = #tpu.dot_dimension_numbers<[1], [1], [0], [0], [0, 0, 1, 0], [], []>} : vector<8x8xbf16>, vector<8x8xbf16>, vector<8x8xf32> -> vector<8x8xf32>
    %211 = arith.addf %210, %154 : vector<8x8xf32>
    %cst_78 = arith.constant dense<0xFF800000> : vector<8xf32>
    %212 = vector.multi_reduction <maximumf>, %211, %cst_78 [1] : vector<8x8xf32> to vector<8xf32>
    %213 = vector.shape_cast %212 : vector<8xf32> to vector<8x1xf32>
    %214 = vector.broadcast %213 : vector<8x1xf32> to vector<8x8xf32>
    %215 = arith.subf %211, %214 : vector<8x8xf32>
    %216 = math.exp %215 : vector<8x8xf32>
    %cst_79 = arith.constant dense<0.000000e+00> : vector<8xf32>
    %217 = vector.multi_reduction <add>, %216, %cst_79 [1] : vector<8x8xf32> to vector<8xf32>
    %218 = vector.shape_cast %217 : vector<8xf32> to vector<8x1xf32>
    %219 = vector.broadcast %218 : vector<8x1xf32> to vector<8x8xf32>
    %220 = arith.divf %216, %219 : vector<8x8xf32>
    %221 = arith.truncf %220 : vector<8x8xf32> to vector<8x8xbf16>
    %cst_80 = arith.constant dense<0.000000e+00> : vector<8x8xf32>
    %222 = tpu.matmul %221, %209, %cst_80 {dimension_numbers = #tpu.dot_dimension_numbers<[1], [0], [0], [1], [0, 0, 1, 1], [], []>} : vector<8x8xbf16>, vector<8x8xbf16>, vector<8x8xf32> -> vector<8x8xf32>
    %223 = arith.truncf %222 : vector<8x8xf32> to vector<8x8xbf16>
    %224 = vector.extract_strided_slice %42 {offsets = [2, 0, 0], sizes = [1, 8, 8], strides = [1, 1, 1]} : vector<4x8x8xbf16> to vector<1x8x8xbf16>
    %225 = vector.shape_cast %224 : vector<1x8x8xbf16> to vector<8x8xbf16>
    %cst_81 = arith.constant dense<0.000000e+00> : vector<8x8xf32>
    %226 = tpu.matmul %223, %225, %cst_81 {dimension_numbers = #tpu.dot_dimension_numbers<[1], [0], [0], [1], [0, 0, 1, 1], [], []>} : vector<8x8xbf16>, vector<8x8xbf16>, vector<8x8xf32> -> vector<8x8xf32>
    %227 = arith.addf %203, %226 : vector<8x8xf32>
    %228 = vector.extract_strided_slice %36 {offsets = [1, 0, 24], sizes = [1, 8, 8], strides = [1, 1, 1]} : vector<2x8x32xbf16> to vector<1x8x8xbf16>
    %229 = vector.shape_cast %228 : vector<1x8x8xbf16> to vector<8x8xbf16>
    %230 = vector.extract_strided_slice %38 {offsets = [1, 0, 24], sizes = [1, 8, 8], strides = [1, 1, 1]} : vector<2x8x32xbf16> to vector<1x8x8xbf16>
    %231 = vector.shape_cast %230 : vector<1x8x8xbf16> to vector<8x8xbf16>
    %232 = vector.extract_strided_slice %40 {offsets = [1, 0, 24], sizes = [1, 8, 8], strides = [1, 1, 1]} : vector<2x8x32xbf16> to vector<1x8x8xbf16>
    %233 = vector.shape_cast %232 : vector<1x8x8xbf16> to vector<8x8xbf16>
    %cst_82 = arith.constant dense<0.000000e+00> : vector<8x8xf32>
    %234 = tpu.matmul %229, %231, %cst_82 {dimension_numbers = #tpu.dot_dimension_numbers<[1], [1], [0], [0], [0, 0, 1, 0], [], []>} : vector<8x8xbf16>, vector<8x8xbf16>, vector<8x8xf32> -> vector<8x8xf32>
    %235 = arith.addf %234, %154 : vector<8x8xf32>
    %cst_83 = arith.constant dense<0xFF800000> : vector<8xf32>
    %236 = vector.multi_reduction <maximumf>, %235, %cst_83 [1] : vector<8x8xf32> to vector<8xf32>
    %237 = vector.shape_cast %236 : vector<8xf32> to vector<8x1xf32>
    %238 = vector.broadcast %237 : vector<8x1xf32> to vector<8x8xf32>
    %239 = arith.subf %235, %238 : vector<8x8xf32>
    %240 = math.exp %239 : vector<8x8xf32>
    %cst_84 = arith.constant dense<0.000000e+00> : vector<8xf32>
    %241 = vector.multi_reduction <add>, %240, %cst_84 [1] : vector<8x8xf32> to vector<8xf32>
    %242 = vector.shape_cast %241 : vector<8xf32> to vector<8x1xf32>
    %243 = vector.broadcast %242 : vector<8x1xf32> to vector<8x8xf32>
    %244 = arith.divf %240, %243 : vector<8x8xf32>
    %245 = arith.truncf %244 : vector<8x8xf32> to vector<8x8xbf16>
    %cst_85 = arith.constant dense<0.000000e+00> : vector<8x8xf32>
    %246 = tpu.matmul %245, %233, %cst_85 {dimension_numbers = #tpu.dot_dimension_numbers<[1], [0], [0], [1], [0, 0, 1, 1], [], []>} : vector<8x8xbf16>, vector<8x8xbf16>, vector<8x8xf32> -> vector<8x8xf32>
    %247 = arith.truncf %246 : vector<8x8xf32> to vector<8x8xbf16>
    %248 = vector.extract_strided_slice %42 {offsets = [3, 0, 0], sizes = [1, 8, 8], strides = [1, 1, 1]} : vector<4x8x8xbf16> to vector<1x8x8xbf16>
    %249 = vector.shape_cast %248 : vector<1x8x8xbf16> to vector<8x8xbf16>
    %cst_86 = arith.constant dense<0.000000e+00> : vector<8x8xf32>
    %250 = tpu.matmul %247, %249, %cst_86 {dimension_numbers = #tpu.dot_dimension_numbers<[1], [0], [0], [1], [0, 0, 1, 1], [], []>} : vector<8x8xbf16>, vector<8x8xbf16>, vector<8x8xf32> -> vector<8x8xf32>
    %251 = arith.addf %227, %250 : vector<8x8xf32>
    %252 = vector.broadcast %44 : vector<1x8xf32> to vector<8x8xf32>
    %253 = arith.addf %251, %252 : vector<8x8xf32>
    %c8 = arith.constant 8 : index
    %c0_87 = arith.constant 0 : index
    %254 = vector.load %arg19[%c8, %c0_87] : memref<16x128xf32, #tpu.memory_space<vmem>>, vector<8x128xf32>
    %255 = arith.truncf %253 : vector<8x8xf32> to vector<8x8xbf16>
    %cst_88 = arith.constant dense<0.000000e+00> : vector<8x128xf32>
    %256 = tpu.matmul %255, %46, %cst_88 {dimension_numbers = #tpu.dot_dimension_numbers<[1], [0], [0], [1], [0, 0, 1, 1], [], []>} : vector<8x8xbf16>, vector<8x128xbf16>, vector<8x128xf32> -> vector<8x128xf32>
    %257 = arith.addf %254, %256 : vector<8x128xf32>
    %c8_89 = arith.constant 8 : index
    %c0_90 = arith.constant 0 : index
    %258 = vector.load %arg19[%c8_89, %c0_90] : memref<16x128xf32, #tpu.memory_space<vmem>>, vector<8x128xf32>
    tpu.vector_store %arg19[%c8_89, %c0_90], %257 {strides = array<i32>} : memref<16x128xf32, #tpu.memory_space<vmem>>, vector<8x128xf32>,
    %c3_i32 = arith.constant 3 : i32
    %259 = arith.cmpi eq, %arg1, %c3_i32 : i32
    %260 = arith.extui %259 : i1 to i32
    %c0_i32_91 = arith.constant 0 : i32
    %261 = arith.cmpi ne, %260, %c0_i32_91 : i32
    scf.if %261 {
      %c0_92 = arith.constant 0 : index
      %c0_93 = arith.constant 0 : index
      %262 = vector.load %arg19[%c0_92, %c0_93] : memref<16x128xf32, #tpu.memory_space<vmem>>, vector<16x128xf32>
      %c0_94 = arith.constant 0 : index
      %c0_95 = arith.constant 0 : index
      %263 = vector.load %arg13[%c0_94, %c0_95] : memref<1x128xf32, #tpu.memory_space<vmem>>, vector<1x128xf32>
      %264 = vector.broadcast %263 : vector<1x128xf32> to vector<16x128xf32>
      %265 = arith.addf %262, %264 : vector<16x128xf32>
      %cst_96 = arith.constant 0.000000e+00 : f32
      %266 = vector.broadcast %cst_96 : f32 to vector<16x128xf32>
      %267 = arith.maximumf %265, %266 : vector<16x128xf32>
      %268 = arith.truncf %267 : vector<16x128xf32> to vector<16x128xbf16>
      %c0_97 = arith.constant 0 : index
      %c0_98 = arith.constant 0 : index
      %269 = vector.load %arg14[%c0_97, %c0_98] : memref<128x32xbf16, #tpu.memory_space<vmem>>, vector<128x32xbf16>
      %cst_99 = arith.constant dense<0.000000e+00> : vector<16x32xf32>
      %270 = tpu.matmul %268, %269, %cst_99 {dimension_numbers = #tpu.dot_dimension_numbers<[1], [0], [0], [1], [0, 0, 1, 1], [], []>} : vector<16x128xbf16>, vector<128x32xbf16>, vector<16x32xf32> -> vector<16x32xf32>
      %c0_100 = arith.constant 0 : index
      %c0_101 = arith.constant 0 : index
      %271 = vector.load %arg15[%c0_100, %c0_101] : memref<1x32xf32, #tpu.memory_space<vmem>>, vector<1x32xf32>
      %272 = vector.broadcast %271 : vector<1x32xf32> to vector<16x32xf32>
      %273 = arith.addf %270, %272 : vector<16x32xf32>
      %cst_102 = arith.constant dense<0.000000e+00> : vector<16xf32>
      %274 = vector.multi_reduction <add>, %273, %cst_102 [1] : vector<16x32xf32> to vector<16xf32>
      %275 = vector.shape_cast %274 : vector<16xf32> to vector<16x1xf32>
      %cst_103 = arith.constant 3.200000e+01 : f32
      %276 = vector.broadcast %cst_103 : f32 to vector<16x1xf32>
      %277 = arith.divf %275, %276 : vector<16x1xf32>
      %278 = vector.broadcast %277 : vector<16x1xf32> to vector<16x32xf32>
      %279 = arith.subf %273, %278 : vector<16x32xf32>
      %280 = arith.mulf %279, %279 : vector<16x32xf32>
      %cst_104 = arith.constant dense<0.000000e+00> : vector<16xf32>
      %281 = vector.multi_reduction <add>, %280, %cst_104 [1] : vector<16x32xf32> to vector<16xf32>
      %282 = vector.shape_cast %281 : vector<16xf32> to vector<16x1xf32>
      %cst_105 = arith.constant 3.200000e+01 : f32
      %283 = vector.broadcast %cst_105 : f32 to vector<16x1xf32>
      %284 = arith.divf %282, %283 : vector<16x1xf32>
      %285 = vector.broadcast %277 : vector<16x1xf32> to vector<16x32xf32>
      %286 = arith.subf %273, %285 : vector<16x32xf32>
      %cst_106 = arith.constant 9.99999974E-6 : f32
      %287 = vector.broadcast %cst_106 : f32 to vector<16x1xf32>
      %288 = arith.addf %284, %287 : vector<16x1xf32>
      %289 = math.rsqrt %288 : vector<16x1xf32>
      %290 = vector.broadcast %289 : vector<16x1xf32> to vector<16x32xf32>
      %291 = arith.mulf %286, %290 : vector<16x32xf32>
      %c0_107 = arith.constant 0 : index
      %c0_108 = arith.constant 0 : index
      %292 = vector.load %arg16[%c0_107, %c0_108] : memref<1x32xf32, #tpu.memory_space<vmem>>, vector<1x32xf32>
      %293 = vector.broadcast %292 : vector<1x32xf32> to vector<16x32xf32>
      %294 = arith.mulf %291, %293 : vector<16x32xf32>
      %c0_109 = arith.constant 0 : index
      %c0_110 = arith.constant 0 : index
      %295 = vector.load %arg17[%c0_109, %c0_110] : memref<1x32xf32, #tpu.memory_space<vmem>>, vector<1x32xf32>
      %296 = vector.broadcast %295 : vector<1x32xf32> to vector<16x32xf32>
      %297 = arith.addf %294, %296 : vector<16x32xf32>
      %298 = vector.shape_cast %297 : vector<16x32xf32> to vector<2x8x32xf32>
      %c0_111 = arith.constant 0 : index
      %c0_112 = arith.constant 0 : index
      %c0_113 = arith.constant 0 : index
      %299 = vector.load %arg18[%c0_111, %c0_112, %c0_113] : memref<2x8x32xf32, #tpu.memory_space<vmem>>, vector<2x8x32xf32>
      tpu.vector_store %arg18[%c0_111, %c0_112, %c0_113], %298 {strides = array<i32>} : memref<2x8x32xf32, #tpu.memory_space<vmem>>, vector<2x8x32xf32>,
    } else {
    }
    return
  }
  func.func @transform_0(%arg0: i32, %arg1: i32) -> (i32, i32, i32) {
    %c0_i32 = arith.constant 0 : i32
    %c0_i32_0 = arith.constant 0 : i32
    %c0_i32_1 = arith.constant 0 : i32
    return %arg0, %c0_i32, %c0_i32_0 : i32, i32, i32
  }
  func.func @transform_1(%arg0: i32, %arg1: i32) -> (i32, i32, i32) {
    %c0_i32 = arith.constant 0 : i32
    %c0_i32_0 = arith.constant 0 : i32
    %c0_i32_1 = arith.constant 0 : i32
    return %arg0, %c0_i32, %c0_i32_0 : i32, i32, i32
  }
  func.func @transform_2(%arg0: i32, %arg1: i32) -> (i32, i32, i32) {
    %c0_i32 = arith.constant 0 : i32
    %c0_i32_0 = arith.constant 0 : i32
    %c0_i32_1 = arith.constant 0 : i32
    return %arg1, %c0_i32, %c0_i32_0 : i32, i32, i32
  }
  func.func @transform_3(%arg0: i32, %arg1: i32) -> (i32, i32, i32) {
    %c0_i32 = arith.constant 0 : i32
    %c0_i32_0 = arith.constant 0 : i32
    %c0_i32_1 = arith.constant 0 : i32
    return %arg1, %c0_i32, %c0_i32_0 : i32, i32, i32
  }
  func.func @transform_4(%arg0: i32, %arg1: i32) -> (i32, i32, i32) {
    %c0_i32 = arith.constant 0 : i32
    %c0_i32_0 = arith.constant 0 : i32
    %c0_i32_1 = arith.constant 0 : i32
    return %arg1, %c0_i32, %c0_i32_0 : i32, i32, i32
  }
  func.func @transform_5(%arg0: i32, %arg1: i32) -> (i32, i32, i32) {
    %c0_i32 = arith.constant 0 : i32
    %c0_i32_0 = arith.constant 0 : i32
    %c0_i32_1 = arith.constant 0 : i32
    return %arg1, %c0_i32, %c0_i32_0 : i32, i32, i32
  }
  func.func @transform_6(%arg0: i32, %arg1: i32) -> (i32, i32, i32) {
    %c0_i32 = arith.constant 0 : i32
    %c0_i32_0 = arith.constant 0 : i32
    %c0_i32_1 = arith.constant 0 : i32
    return %arg1, %c0_i32, %c0_i32_0 : i32, i32, i32
  }
  func.func @transform_7(%arg0: i32, %arg1: i32) -> (i32, i32, i32) {
    %c0_i32 = arith.constant 0 : i32
    %c0_i32_0 = arith.constant 0 : i32
    %c0_i32_1 = arith.constant 0 : i32
    return %arg1, %c0_i32, %c0_i32_0 : i32, i32, i32
  }
  func.func @transform_8(%arg0: i32, %arg1: i32) -> (i32, i32, i32, i32) {
    %c0_i32 = arith.constant 0 : i32
    %c0_i32_0 = arith.constant 0 : i32
    %c0_i32_1 = arith.constant 0 : i32
    %c0_i32_2 = arith.constant 0 : i32
    return %arg1, %c0_i32, %c0_i32_0, %c0_i32_1 : i32, i32, i32, i32
  }
  func.func @transform_9(%arg0: i32, %arg1: i32) -> (i32, i32, i32) {
    %c0_i32 = arith.constant 0 : i32
    %c0_i32_0 = arith.constant 0 : i32
    %c0_i32_1 = arith.constant 0 : i32
    return %arg1, %c0_i32, %c0_i32_0 : i32, i32, i32
  }
  func.func @transform_10(%arg0: i32, %arg1: i32) -> (i32, i32, i32) {
    %c0_i32 = arith.constant 0 : i32
    %c0_i32_0 = arith.constant 0 : i32
    %c0_i32_1 = arith.constant 0 : i32
    return %arg1, %c0_i32, %c0_i32_0 : i32, i32, i32
  }
  func.func @transform_11(%arg0: i32, %arg1: i32) -> (i32, i32) {
    %c0_i32 = arith.constant 0 : i32
    %c0_i32_0 = arith.constant 0 : i32
    %c0_i32_1 = arith.constant 0 : i32
    return %c0_i32, %c0_i32_0 : i32, i32
  }
  func.func @transform_12(%arg0: i32, %arg1: i32) -> (i32, i32) {
    %c0_i32 = arith.constant 0 : i32
    %c0_i32_0 = arith.constant 0 : i32
    %c0_i32_1 = arith.constant 0 : i32
    return %c0_i32, %c0_i32_0 : i32, i32
  }
  func.func @transform_13(%arg0: i32, %arg1: i32) -> (i32, i32) {
    %c0_i32 = arith.constant 0 : i32
    %c0_i32_0 = arith.constant 0 : i32
    %c0_i32_1 = arith.constant 0 : i32
    return %c0_i32, %c0_i32_0 : i32, i32
  }
  func.func @transform_14(%arg0: i32, %arg1: i32) -> (i32, i32) {
    %c0_i32 = arith.constant 0 : i32
    %c0_i32_0 = arith.constant 0 : i32
    %c0_i32_1 = arith.constant 0 : i32
    return %c0_i32, %c0_i32_0 : i32, i32
  }
  func.func @transform_15(%arg0: i32, %arg1: i32) -> (i32, i32) {
    %c0_i32 = arith.constant 0 : i32
    %c0_i32_0 = arith.constant 0 : i32
    %c0_i32_1 = arith.constant 0 : i32
    return %c0_i32, %c0_i32_0 : i32, i32
  }
  func.func @transform_16(%arg0: i32, %arg1: i32) -> (i32, i32, i32) {
    %c0_i32 = arith.constant 0 : i32
    %c0_i32_0 = arith.constant 0 : i32
    %c0_i32_1 = arith.constant 0 : i32
    return %arg0, %c0_i32, %c0_i32_0 : i32, i32, i32
  }
}

</mosaic_0001>

<bundles_post_ra>
// kernel: tpu_custom_call.1
= control target key start
LH: loop header
LB: loop body
LE: loop exit
PB: predicated region body
PF: predicated region fallthrough
CT: control target
= control target key end

     0   :  { %s4579_s0 = inlined_call_operand.vmem [shape: f32[2,8,32], index: 0, kind: input, shape index: {}]   ;;  %s4580_s1 = inlined_call_operand.hbm [shape: f32[2,8,8], index: 1, kind: input, shape index: {}]   ;;  %s4581_s2 = inlined_call_operand.vmem [shape: bf16[4,32,32], index: 2, kind: input, shape index: {}]   ;;  %s4582_s3 = inlined_call_operand.hbm [shape: f32[4,1,32], index: 3, kind: input, shape index: {}]   ;;  %s4583_s4 = inlined_call_operand.hbm [shape: bf16[4,32,32], index: 4, kind: input, shape index: {}]   ;;  %s4584_s5 = inlined_call_operand.hbm [shape: f32[4,1,32], index: 5, kind: input, shape index: {}]   ;;  %s4585_s6 = inlined_call_operand.hbm [shape: bf16[4,32,32], index: 6, kind: input, shape index: {}]   ;;  %s4586_s7 = inlined_call_operand.hbm [shape: f32[4,1,32], index: 7, kind: input, shape index: {}]   ;;  %s4587_s8 = inlined_call_operand.hbm [shape: bf16[4,4,8,8], index: 8, kind: input, shape index: {}]   ;;  %s4588_s9 = inlined_call_operand.hbm [shape: f32[4,1,8], index: 9, kind: input, shape index: {}]   ;;  %s4589_s10 = inlined_call_operand.vmem [shape: bf16[4,8,128], index: 10, kind: input, shape index: {}]   ;;  %s4590_s11 = inlined_call_operand.vmem [shape: f32[1,128], index: 11, kind: input, shape index: {}]   ;;  %s4591_s12 = inlined_call_operand.vmem [shape: bf16[128,32], index: 12, kind: input, shape index: {}]   ;;  %s4592_s13 = inlined_call_operand.vmem [shape: f32[1,32], index: 13, kind: input, shape index: {}]   ;;  %s4593_s14 = inlined_call_operand.vmem [shape: f32[1,32], index: 14, kind: input, shape index: {}]   ;;  %s4594_s15 = inlined_call_operand.vmem [shape: f32[1,32], index: 15, kind: input, shape index: {}]   ;;  %s4595_s16 = inlined_call_operand.hbm [shape: f32[2,8,32], index: 16, kind: output, shape index: {}]  }
   0x1   :  { %4611 = sst [smem:[#allocation29_spill]] %s4579_s0 }
   0x2   :  { %4612 = sst [smem:[#allocation30_spill]] %s4581_s2 }
   0x3   :  { %4613 = sst [smem:[#allocation31_spill]] %s4582_s3 }
   0x4   :  { %4614 = sst [smem:[#allocation32_spill]] %s4584_s5 }
   0x5   :  { %4615 = sst [smem:[#allocation33_spill]] %s4586_s7 }
   0x6   :  { %4616 = sst [smem:[#allocation34_spill]] %s4589_s10 }
   0x7   :  { %4617 = sst [smem:[#allocation35_spill]] %s4590_s11 }
   0x8   :  { %4618 = sst [smem:[#allocation36_spill]] %s4591_s12 }
   0x9   :  { %4619 = sst [smem:[#allocation37_spill]] %s4592_s13 }
   0xa   :  { %4620 = sst [smem:[#allocation38_spill]] %s4593_s14 }
   0xb   :  { %4621 = sst [smem:[#allocation39_spill]] %s4594_s15 }
   0xc   :  { %4622 = sst [smem:[#allocation40_spill]] %s4595_s16 }
   0xd   :  { %21 = vsyncpa [#allocation4], 0 }
   0xe   :  { %22 = vsyncpa [#allocation7], 0 }
   0xf   :  { %24 = vsyncpa [#allocation7 + $0x1], 0 }
  0x10   :  { %25 = vsyncpa [#allocation10], 0 }
  0x11   :  { %27 = vsyncpa [#allocation10 + $0x1], 0 }
  0x12   :  { %28 = vsyncpa [#allocation13], 0 }
  0x13   :  { %30 = vsyncpa [#allocation13 + $0x1], 0 }
  0x14   :  { %31 = vsyncpa [#allocation16], 0 }
  0x15   :  { %33 = vsyncpa [#allocation16 + $0x1], 0 }
  0x16   :  { %34 = vsyncpa [#allocation5], 0  ;;  %s3819_s21 = smov 0   ;;  %s3821_s22 = smov 0  }
  0x17   :  { %s3823_s23 = smov 0   ;;  %s3825_s24 = smov 0  }
  0x18   :  { %s3827_s25 = smov 0   ;;  %s3829_s26 = smov 0  }
  0x19 LB: > { %4623 = sst [smem:[#allocation24_spill]] %s3696_s23  ;;  %s49_s27 = sadd.s32 1, %s3704_s25  ;;  %s3708_s26 = sphi %s3829_s26, %s40_s26   ;;  %s3704_s25 = sphi %s3827_s25, %s4665_s25   ;;  %s3700_s24 = sphi %s3825_s24, %s4664_s24   ;;  %s3696_s23 = sphi %s3823_s23, %s4663_s23   ;;  %s3692_s22 = sphi %s3821_s22, %s4667_s22   ;;  %s3688_s21 = sphi %s3819_s21, %s4666_s21  }
  0x1a   : > { %4624 = sst [smem:[#allocation25_spill]] %s3704_s25  ;;  %s137_s28 = sadd.s32 1, %s3696_s23 }
  0x1b   : > { %4625 = sst [smem:[#allocation26_spill]] %s3708_s26  ;;  %p50_p0 = scmp.ge.s32.totalorder %s49_s27, 4 }
  0x1c   : > { %p144_p1 = scmp.ne.s32.totalorder %s3696_s23, %s3692_s22  ;;  %p145_p2 = scmp.eq.s32.totalorder %s3708_s26, 0 }
  0x1d   : > { %s4669_s27 = smov (%p50_p0, %s49_s27), 0  ;;  %p3255_p4 = scmp.lt.s32.totalorder %s3708_s26, 4 }
  0x1e   : > { %4626 = sst [smem:[#allocation27_spill]] %s4669_s27  ;;  %p146_p3 = por %p145_p2, %p144_p1 }
  0x1f   : > { %s134_s29 = ssub.s32 %s3704_s25, %s4669_s27  ;;  %s3860_s30 = sand.u32 1, %s3708_s26  }
  0x20   : > { %p135_p5 = scmp.eq.s32.totalorder %s134_s29, 0  ;;  %s3863_s0 = sand.u32 1, %s3696_s23  }
  0x21   : > { %s3866_s17 = sshll.u32 %s3704_s25, 4  ;;  %s4628_s3 = sld [smem:[#allocation31_spill]] }
  0x22   : > { %s3869_s18 = scalar_select %p135_p5, %s3696_s23, %s137_s28  }
  0x23   : > { %s538_s27 = scalar_lea.vmem [#allocation6], %s3863_s0  ;;  %p3878_p6 = pnand %p3255_p4, %p146_p3 }
  0x24   : > { %4627 = sst [smem:[#allocation28_spill]] %s3869_s18  ;;  %s545_s15 = sshll.u32 %s538_s27, 4  ;;  %s3882_s15 = int_to_ptr.vmem [resolvable:$true] %s545_s15 }
  0x25   : > { %s4629_s29 = scalar_select %p3878_p6, 1, 0 }
  0x26   : > { %p3889_p8 = pneg %p3878_p6 }
  0x27   : > { %s3875_s16 = scalar_lea.hbm %s4628_s3, %s3866_s17  ;;  %s3379_s23 = scalar_lea.hbm %s4628_s3, 64 }
  0x28   : > { %s3374_s18 = scalar_lea.hbm %s3875_s16, 16  ;;  %p3380_p11 = scmp.lt.u32.totalorder %s3875_s16, %s4628_s3 }
  0x29   : > { %p3375_p7 = scmp.ne.s32.totalorder %s3875_s16, %s3374_s18  ;;  %p3381_p12 = scmp.lt.u32.totalorder %s3379_s23, %s3374_s18 }
  0x2a   : > { %s4630_s19 = scalar_select %p3889_p8, 1, 0 }
  0x2b   : > { %p3377_p9 = pnand %p3889_p8, %p3375_p7  ;;  %p3382_p13 = por %p3381_p12, %p3380_p11 }
  0x2c   : > { %p3383_p0 = scmp.lt.u32.totalorder %s3374_s18, %s3875_s16 }
  0x2d   : > { %p3378_p10 = pneg %p3377_p9 }
  0x2e   : > { %p3384_p1 = por %p3383_p0, %p3382_p13 }
  0x30   : > { %p3385_p2 = pnand %p3384_p1, %p3378_p10 }
  0x32   : > { %3388 = shalt.err (!%p3385_p2)
}
  0x33   : > { %s3389_s28 = scalar_lea.vmem %s3882_s15, 16  ;;  %s3710_s27 = smov [#allocation6]  }
  0x34   : > { %p3390_p3 = scmp.ne.s32.totalorder %s3882_s15, %s3389_s28  ;;  %s3394_s20 = sshll.u32 %s3710_s27, 4  ;;  %s3395_s20 = int_to_ptr.vmem [resolvable:$false] %s3394_s20 }
  0x35   : > { %s3396_s13 = scalar_lea.vmem %s3395_s20, 32  ;;  %p3397_p7 = scmp.lt.s32.totalorder %s3882_s15, %s3395_s20 }
  0x36   : > { %p3392_p4 = pnand %p3390_p3, %p3889_p8  ;;  %p3398_p9 = scmp.lt.s32.totalorder %s3396_s13, %s3389_s28 }
  0x38   : > { %p3393_p5 = pneg %p3392_p4  ;;  %p3399_p11 = por %p3398_p9, %p3397_p7 }
  0x3a   : > { %p3400_p12 = pnand %p3399_p11, %p3393_p5 }
  0x3c   : > { %3403 = shalt.err (!%p3400_p12)
}
  0x3d   : > { %s4631_s14 = scalar_lea.sflag [#allocation7], %s3860_s30  ;;  %s4632_s5 = sld [smem:[#allocation32_spill]] }
  0x3e   : > { %3235 = dma.hbm_to_vmem [thread:$0]  (!%p3878_p6), %s3875_s16, 16, %s3882_s15, %s4631_s14  }
  0x3f   : > { %s576_s28 = scalar_lea.vmem [#allocation9], %s3863_s0 }
  0x40   : > { %s583_s20 = sshll.u32 %s576_s28, 4  ;;  %s584_s20 = int_to_ptr.vmem [resolvable:$true] %s583_s20 }
  0x43   : > { %s3918_s27 = scalar_lea.hbm %s4632_s5, %s3866_s17  ;;  %s3409_s16 = scalar_lea.hbm %s4632_s5, 64 }
  0x44   : > { %s3404_s3 = scalar_lea.hbm %s3918_s27, 16  ;;  %p3410_p1 = scmp.lt.u32.totalorder %s3918_s27, %s4632_s5 }
  0x45   : > { %p3405_p10 = scmp.ne.s32.totalorder %s3918_s27, %s3404_s3  ;;  %p3411_p2 = scmp.lt.u32.totalorder %s3409_s16, %s3404_s3 }
  0x46   : > { %p3413_p4 = scmp.lt.u32.totalorder %s3404_s3, %s3918_s27 }
  0x47   : > { %p3407_p13 = pnand %p3405_p10, %p3889_p8  ;;  %p3412_p3 = por %p3411_p2, %p3410_p1 }
  0x49   : > { %p3408_p0 = pneg %p3407_p13  ;;  %p3414_p5 = por %p3413_p4, %p3412_p3 }
  0x4b   : > { %p3415_p7 = pnand %p3414_p5, %p3408_p0 }
  0x4d   : > { %3418 = shalt.err (!%p3415_p7)
}
  0x4e   : > { %s3419_s18 = scalar_lea.vmem %s584_s20, 16  ;;  %s3711_s28 = smov [#allocation9]  }
  0x4f   : > { %p3420_p9 = scmp.ne.s32.totalorder %s584_s20, %s3419_s18  ;;  %s3424_s13 = sshll.u32 %s3711_s28, 4  ;;  %s3425_s13 = int_to_ptr.vmem [resolvable:$false] %s3424_s13 }
  0x50   : > { %s3426_s11 = scalar_lea.vmem %s3425_s13, 32  ;;  %p3427_p10 = scmp.lt.s32.totalorder %s584_s20, %s3425_s13 }
  0x51   : > { %p3422_p11 = pnand %p3420_p9, %p3889_p8  ;;  %p3428_p13 = scmp.lt.s32.totalorder %s3426_s11, %s3419_s18 }
  0x53   : > { %p3423_p12 = pneg %p3422_p11  ;;  %p3429_p6 = por %p3428_p13, %p3427_p10 }
  0x55   : > { %p3430_p1 = pnand %p3429_p6, %p3423_p12 }
  0x57   : > { %3433 = shalt.err (!%p3430_p1)
}
  0x58   : > { %p4633_p2 = scmp.ne.s32.totalorder %s4629_s29, 0  ;;  %s4634_s3 = scalar_lea.sflag [#allocation10], %s3860_s30 }
  0x59   : > { %s4635_s7 = sld [smem:[#allocation33_spill]]  ;;  %s614_s13 = scalar_lea.vmem [#allocation12], %s3863_s0 }
  0x5a   : > { %3241 = dma.hbm_to_vmem [thread:$0]  (!%p4633_p2), %s3918_s27, 16, %s584_s20, %s4634_s3  }
  0x5b   : > { %s621_s23 = sshll.u32 %s614_s13, 4  ;;  %s622_s23 = int_to_ptr.vmem [resolvable:$true] %s621_s23 }
  0x5f   : > { %s3945_s14 = scalar_lea.hbm %s4635_s7, %s3866_s17  ;;  %s3439_s20 = scalar_lea.hbm %s4635_s7, 64 }
  0x60   : > { %s3434_s28 = scalar_lea.hbm %s3945_s14, 16  ;;  %p3440_p4 = scmp.lt.u32.totalorder %s3945_s14, %s4635_s7 }
  0x61   : > { %p3435_p6 = scmp.ne.s32.totalorder %s3945_s14, %s3434_s28  ;;  %p3441_p5 = scmp.lt.u32.totalorder %s3439_s20, %s3434_s28 }
  0x62   : > { %p3443_p9 = scmp.lt.u32.totalorder %s3434_s28, %s3945_s14 }
  0x63   : > { %p3437_p0 = pnand %p3435_p6, %p3889_p8  ;;  %p3442_p7 = por %p3441_p5, %p3440_p4 }
  0x65   : > { %p3438_p3 = pneg %p3437_p0  ;;  %p3444_p11 = por %p3443_p9, %p3442_p7 }
  0x67   : > { %p3445_p12 = pnand %p3444_p11, %p3438_p3 }
  0x69   : > { %3448 = shalt.err (!%p3445_p12)
}
  0x6a   : > { %s3449_s16 = scalar_lea.vmem %s622_s23, 16  ;;  %s3712_s13 = smov [#allocation12]  }
  0x6b   : > { %p3450_p10 = scmp.ne.s32.totalorder %s622_s23, %s3449_s16  ;;  %s3454_s18 = sshll.u32 %s3712_s13, 4  ;;  %s3455_s18 = int_to_ptr.vmem [resolvable:$false] %s3454_s18 }
  0x6c   : > { %s3456_s11 = scalar_lea.vmem %s3455_s18, 32  ;;  %p3457_p6 = scmp.lt.s32.totalorder %s622_s23, %s3455_s18 }
  0x6d   : > { %p3452_p13 = pnand %p3450_p10, %p3889_p8  ;;  %p3458_p0 = scmp.lt.s32.totalorder %s3456_s11, %s3449_s16 }
  0x6f   : > { %p3453_p1 = pneg %p3452_p13  ;;  %p3459_p2 = por %p3458_p0, %p3457_p6 }
  0x71   : > { %p3460_p4 = pnand %p3459_p2, %p3453_p1 }
  0x73   : > { %3463 = shalt.err (!%p3460_p4)
}
  0x74   : > { %p4636_p5 = scmp.ne.s32.totalorder %s4629_s29, 0  ;;  %s4637_s28 = scalar_lea.sflag [#allocation13], %s3860_s30 }
  0x75   : > { %s3969_s27 = sadd.s32 4294967295, %s3708_s26   ;;  %p150_p2 = scmp.ne.s32.totalorder %s3692_s22, %s3688_s21 }
  0x76   : > { %3247 = dma.hbm_to_vmem [thread:$0]  (!%p4636_p5), %s3945_s14, 16, %s622_s23, %s4637_s28  }
  0x77   : > { %p4605_p3 = scmp.eq.s32.totalorder %s3969_s27, 0  ;;  %p2838_p7 = scmp.ge.s32.totalorder %s3708_s26, 1 }
  0x78   : > { %p474_p9 = scmp.lt.s32.totalorder %s3708_s26, 5  ;;  %s3713_s14 = smov [#allocation3]  }
  0x79   : > { %p3978_p11 = por %p4605_p3, %p150_p2  ;;  %s498_s23 = sshll.u32 %s3713_s14, 4  ;;  %s3986_s23 = int_to_ptr.vmem [resolvable:$true] %s498_s23 }
  0x7a   : > { %p3982_p12 = pnand %p2838_p7, %p474_p9  ;;  %s3991_s21 = sshll.u32 %s3863_s0, 4 }
  0x7b   : > { %s4638_s18 = scalar_select %p3978_p11, 1, 0 }
  0x7c   : > { %s4639_s20 = scalar_select %p3982_p12, 1, 0 }
  0x7d   : > { %p3228_p10 = pneg %p3982_p12  ;;  %s3994_s3 = sshll.u32 %s3704_s25, 8 }
  0x7e   : > { %s4006_s11 = scalar_lea.hbm %s4583_s4, %s3994_s3  ;;  %s556_s28 = scalar_lea.vmem [#allocation8], %s3991_s21 }
  0x7f   : > { %p3998_p13 = pnand %p3228_p10, %p4605_p3  ;;  %s563_s14 = sshll.u32 %s556_s28, 4  ;;  %s4009_s14 = int_to_ptr.vmem [resolvable:$true] %s563_s14 }
  0x80   : > { %s3464_s25 = scalar_lea.hbm %s4580_s1, 256 }
  0x81   : > { %p3465_p1 = scmp.ne.s32.totalorder %s4580_s1, %s3464_s25  ;;  %p3466_p6 = pneg %p3998_p13 }
  0x82   : > { %p3471_p2 = scmp.lt.u32.totalorder %s3464_s25, %s4580_s1 }
  0x83   : > { %p3467_p0 = pnand %p3466_p6, %p3465_p1 }
  0x85   : > { %p3468_p4 = pneg %p3467_p0 }
  0x87   : > { %p3473_p7 = pnand %p3471_p2, %p3468_p4 }
  0x89   : > { %3476 = shalt.err (!%p3473_p7)
}
  0x8a   : > { %s3477_s28 = scalar_lea.vmem %s3986_s23, 256  ;;  %p3485_p11 = scmp.lt.s32.totalorder %s3986_s23, %s3986_s23 }
  0x8b   : > { %p3478_p9 = scmp.ne.s32.totalorder %s3986_s23, %s3477_s28  ;;  %p3486_p12 = scmp.lt.s32.totalorder %s3477_s28, %s3477_s28 }
  0x8d   : > { %p3480_p10 = pnand %p3478_p9, %p3466_p6  ;;  %p3487_p5 = por %p3486_p12, %p3485_p11 }
  0x8f   : > { %p3481_p3 = pneg %p3480_p10 }
  0x91   : > { %p3488_p8 = pnand %p3487_p5, %p3481_p3 }
  0x93   : > { %3491 = shalt.err (!%p3488_p8)
}
  0x94   : > { %s3714_s5 = smov 128   ;;  %s3715_s7 = smov 8  }
  0x95   : > { %3231 = dma.hbm_to_vmem [thread:$0]  (!%p3998_p13), %s4580_s1, 256, %s3986_s23, [#allocation4], %s3714_s5, %s3714_s5, %s3715_s7  }
  0x96   : > { %s3492_s26 = scalar_lea.hbm %s4006_s11, 256  ;;  %p4641_p6 = scmp.ne.s32.totalorder %s4630_s19, 0 }
  0x97   : > { %p3493_p1 = scmp.ne.s32.totalorder %s4006_s11, %s3492_s26  ;;  %s3497_s28 = scalar_lea.hbm %s4583_s4, 1024 }
  0x98   : > { %p3498_p8 = scmp.lt.u32.totalorder %s4006_s11, %s4583_s4  ;;  %p3499_p3 = scmp.lt.u32.totalorder %s3497_s28, %s3492_s26 }
  0x99   : > { %p3495_p11 = pnand %p3493_p1, %p4641_p6  ;;  %p3501_p0 = scmp.lt.u32.totalorder %s3492_s26, %s4006_s11 }
  0x9a   : > { %p3500_p12 = por %p3499_p3, %p3498_p8 }
  0x9b   : > { %p3496_p5 = pneg %p3495_p11 }
  0x9c   : > { %p3502_p4 = por %p3501_p0, %p3500_p12 }
  0x9e   : > { %p3503_p2 = pnand %p3502_p4, %p3496_p5 }
  0xa0   : > { %3506 = shalt.err (!%p3503_p2)
}
  0xa1   : > { %s3507_s23 = scalar_lea.vmem %s4009_s14, 256  ;;  %s3716_s15 = smov [#allocation8]  }
  0xa2   : > { %p3508_p13 = scmp.ne.s32.totalorder %s4009_s14, %s3507_s23  ;;  %s3512_s5 = sshll.u32 %s3716_s15, 4  ;;  %s3513_s5 = int_to_ptr.vmem [resolvable:$false] %s3512_s5 }
  0xa3   : > { %s3514_s2 = scalar_lea.vmem %s3513_s5, 512  ;;  %p3515_p10 = scmp.lt.s32.totalorder %s4009_s14, %s3513_s5 }
  0xa4   : > { %p3510_p7 = pnand %p3508_p13, %p4641_p6  ;;  %p3516_p1 = scmp.lt.s32.totalorder %s3514_s2, %s3507_s23 }
  0xa6   : > { %p3511_p9 = pneg %p3510_p7  ;;  %p3517_p11 = por %p3516_p1, %p3515_p10 }
  0xa8   : > { %p3518_p8 = pnand %p3517_p11, %p3511_p9 }
  0xaa   : > { %3521 = shalt.err (!%p3518_p8)
}
  0xab   : > { %s3717_s10 = smov 64   ;;  %s3718_s7 = smov 4  }
  0xac   : > { %p4642_p5 = scmp.ne.s32.totalorder %s4629_s29, 0  ;;  %s4643_s12 = scalar_lea.sflag [#allocation7], %s3860_s30 }
  0xad   : > { %s4062_s16 = scalar_lea.hbm %s4585_s6, %s3994_s3  ;;  %s594_s13 = scalar_lea.vmem [#allocation11], %s3991_s21 }
  0xae   : > { %3238 = dma.hbm_to_vmem [thread:$0]  (!%p4642_p5), %s4006_s11, 256, %s4009_s14, %s4643_s12, %s3717_s10, %s3717_s10, %s3718_s7  }
  0xaf   : > { %s601_s28 = sshll.u32 %s594_s13, 4  ;;  %s4071_s5 = scalar_lea.hbm %s4587_s8, %s3994_s3  ;;  %s4065_s28 = int_to_ptr.vmem [resolvable:$true] %s601_s28 }
  0xb0   : > { %s3522_s2 = scalar_lea.hbm %s4062_s16, 256  ;;  %s3527_s12 = scalar_lea.hbm %s4585_s6, 1024 }
  0xb1   : > { %p3523_p3 = scmp.ne.s32.totalorder %s4062_s16, %s3522_s2  ;;  %p3528_p4 = scmp.lt.u32.totalorder %s4062_s16, %s4585_s6 }
  0xb2   : > { %p3529_p2 = scmp.lt.u32.totalorder %s3527_s12, %s3522_s2  ;;  %p3531_p7 = scmp.lt.u32.totalorder %s3522_s2, %s4062_s16 }
  0xb3   : > { %p3525_p12 = pnand %p3523_p3, %p4641_p6 }
  0xb4   : > { %p3530_p13 = por %p3529_p2, %p3528_p4 }
  0xb5   : > { %p3526_p0 = pneg %p3525_p12 }
  0xb6   : > { %p3532_p9 = por %p3531_p7, %p3530_p13 }
  0xb8   : > { %p3533_p10 = pnand %p3532_p9, %p3526_p0 }
  0xba   : > { %3536 = shalt.err (!%p3533_p10)
}
  0xbb   : > { %s3537_s3 = scalar_lea.vmem %s4065_s28, 256  ;;  %s3719_s13 = smov [#allocation11]  }
  0xbc   : > { %p3538_p1 = scmp.ne.s32.totalorder %s4065_s28, %s3537_s3  ;;  %s3542_s23 = sshll.u32 %s3719_s13, 4  ;;  %s3543_s23 = int_to_ptr.vmem [resolvable:$false] %s3542_s23 }
  0xbd   : > { %s3544_s15 = scalar_lea.vmem %s3543_s23, 512  ;;  %p3545_p3 = scmp.lt.s32.totalorder %s4065_s28, %s3543_s23 }
  0xbe   : > { %p3540_p11 = pnand %p3538_p1, %p4641_p6  ;;  %p3546_p12 = scmp.lt.s32.totalorder %s3544_s15, %s3537_s3 }
  0xc0   : > { %p3541_p8 = pneg %p3540_p11  ;;  %p3547_p4 = por %p3546_p12, %p3545_p3 }
  0xc2   : > { %p3548_p2 = pnand %p3547_p4, %p3541_p8 }
  0xc4   : > { %3551 = shalt.err (!%p3548_p2)
}
  0xc5   : > { %s4644_s2 = scalar_lea.sflag [#allocation10], %s3860_s30  ;;  %s632_s11 = scalar_lea.vmem [#allocation14], %s3991_s21 }
  0xc6   : > { %3244 = dma.hbm_to_vmem [thread:$0]  (!%p4642_p5), %s4062_s16, 256, %s4065_s28, %s4644_s2, %s3717_s10, %s3717_s10, %s3718_s7  }
  0xc7   : > { %s639_s14 = sshll.u32 %s632_s11, 4  ;;  %s3552_s12 = scalar_lea.hbm %s4071_s5, 256  ;;  %s4100_s14 = int_to_ptr.vmem [resolvable:$true] %s639_s14 }
  0xc8   : > { %p3553_p0 = scmp.ne.s32.totalorder %s4071_s5, %s3552_s12  ;;  %s3557_s3 = scalar_lea.hbm %s4587_s8, 1024 }
  0xc9   : > { %p3558_p9 = scmp.lt.u32.totalorder %s4071_s5, %s4587_s8  ;;  %p3559_p10 = scmp.lt.u32.totalorder %s3557_s3, %s3552_s12 }
  0xca   : > { %p3555_p13 = pnand %p3553_p0, %p4641_p6  ;;  %p3561_p11 = scmp.lt.u32.totalorder %s3552_s12, %s4071_s5 }
  0xcb   : > { %p3560_p1 = por %p3559_p10, %p3558_p9 }
  0xcc   : > { %p3556_p7 = pneg %p3555_p13 }
  0xcd   : > { %p3562_p8 = por %p3561_p11, %p3560_p1 }
  0xcf   : > { %p3563_p3 = pnand %p3562_p8, %p3556_p7 }
  0xd1   : > { %3566 = shalt.err (!%p3563_p3)
}
  0xd2   : > { %s3567_s21 = scalar_lea.vmem %s4100_s14, 256  ;;  %s3720_s16 = smov [#allocation14]  }
  0xd3   : > { %p3568_p12 = scmp.ne.s32.totalorder %s4100_s14, %s3567_s21  ;;  %s3572_s28 = sshll.u32 %s3720_s16, 4  ;;  %s3573_s28 = int_to_ptr.vmem [resolvable:$false] %s3572_s28 }
  0xd4   : > { %s3574_s15 = scalar_lea.vmem %s3573_s28, 512  ;;  %p3575_p0 = scmp.lt.s32.totalorder %s4100_s14, %s3573_s28 }
  0xd5   : > { %p3570_p4 = pnand %p3568_p12, %p4641_p6  ;;  %p3576_p13 = scmp.lt.s32.totalorder %s3574_s15, %s3567_s21 }
  0xd7   : > { %p3571_p2 = pneg %p3570_p4  ;;  %p3577_p9 = por %p3576_p13, %p3575_p0 }
  0xd9   : > { %p3578_p10 = pnand %p3577_p9, %p3571_p2 }
  0xdb   : > { %3581 = shalt.err (!%p3578_p10)
}
  0xdc   : > { %s4645_s2 = scalar_lea.sflag [#allocation13], %s3860_s30  ;;  %s4132_s25 = scalar_lea.hbm %s4588_s9, %s3866_s17 }
  0xdd   : > { %3250 = dma.hbm_to_vmem [thread:$0]  (!%p4642_p5), %s4071_s5, 256, %s4100_s14, %s4645_s2, %s3717_s10, %s3717_s10, %s3718_s7  }
  0xde   : > { %s652_s26 = scalar_lea.vmem [#allocation15], %s3863_s0  ;;  %s650_s30 = scalar_lea.sflag [#allocation16], %s3863_s0 }
  0xdf   : > { %s659_s3 = sshll.u32 %s652_s26, 4  ;;  %s3582_s13 = scalar_lea.hbm %s4132_s25, 16  ;;  %s660_s3 = int_to_ptr.vmem [resolvable:$true] %s659_s3 }
  0xe0   : > { %p3583_p7 = scmp.ne.s32.totalorder %s4132_s25, %s3582_s13  ;;  %s3587_s7 = scalar_lea.hbm %s4588_s9, 64 }
  0xe1   : > { %p3588_p8 = scmp.lt.u32.totalorder %s4132_s25, %s4588_s9  ;;  %p3589_p3 = scmp.lt.u32.totalorder %s3587_s7, %s3582_s13 }
  0xe2   : > { %p3585_p1 = pnand %p3583_p7, %p4641_p6  ;;  %p3591_p4 = scmp.lt.u32.totalorder %s3582_s13, %s4132_s25 }
  0xe3   : > { %p3590_p12 = por %p3589_p3, %p3588_p8 }
  0xe4   : > { %p3586_p11 = pneg %p3585_p1 }
  0xe5   : > { %p3592_p2 = por %p3591_p4, %p3590_p12 }
  0xe7   : > { %p3593_p0 = pnand %p3592_p2, %p3586_p11 }
  0xe9   : > { %3596 = shalt.err (!%p3593_p0)
}
  0xea   : > { %s3597_s0 = scalar_lea.vmem %s660_s3, 16  ;;  %s3721_s14 = smov [#allocation15]  }
  0xeb   : > { %p3598_p13 = scmp.ne.s32.totalorder %s660_s3, %s3597_s0  ;;  %s3602_s21 = sshll.u32 %s3721_s14, 4  ;;  %s3603_s21 = int_to_ptr.vmem [resolvable:$false] %s3602_s21 }
  0xec   : > { %s3604_s16 = scalar_lea.vmem %s3603_s21, 32  ;;  %p3605_p7 = scmp.lt.s32.totalorder %s660_s3, %s3603_s21 }
  0xed   : > { %p3600_p9 = pnand %p3598_p13, %p4641_p6  ;;  %p3606_p1 = scmp.lt.s32.totalorder %s3604_s16, %s3597_s0 }
  0xef   : > { %p3601_p10 = pneg %p3600_p9  ;;  %p3607_p5 = por %p3606_p1, %p3605_p7 }
  0xf1   : > { %p3608_p3 = pnand %p3607_p5, %p3601_p10 }
  0xf3   : > { %3611 = shalt.err (!%p3608_p3)
}
  0xf4   : > { %p4646_p8 = scmp.ne.s32.totalorder %s4629_s29, 0  ;;  %p4647_p11 = scmp.ne.s32.totalorder %s4639_s20, 0 }
  0xf5   : > { %p4648_p12 = scmp.eq.s32.totalorder (!%p4647_p11), %s3969_s27, 0 }
  0xf6   : > { %3253 = dma.hbm_to_vmem [thread:$0]  (!%p4646_p8), %s4132_s25, 16, %s660_s3, %s650_s30  }
  0xf7   : > { %675 = sbr.rel (%p4647_p11) target bundleno = 5721 (0x1659), region = 84 }
  0xfe   : > { %3663 = dma.done.wait (%p4648_p12), [#allocation4], 256   ;;  %p4649_p6 = pmov %p4648_p12 }
  0xff   : > { %s681_s19 = sand.u32 1, %s3969_s27   ;;  %s4161_s28 = sand.u32 1, %s3692_s22  }
 0x100   : > { %3665 = vsyncadd (%p4649_p6), [#allocation4], 4294967040  ;;  %s682_s15 = scalar_lea.sflag [#allocation7], %s681_s19  ;;  %s684_s29 = scalar_lea.vmem [#allocation6], %s4161_s28 }
 0x101   : > { %p4650_p5 = scmp.ne.s32.totalorder %s4638_s18, 0 }
 0x103   : > { %3667 = dma.done.wait (%p4650_p5), %s682_s15, 272  }
 0x104   : > { %3669 = vsyncadd (%p4650_p5), %s682_s15, 4294967024  ;;  %s4169_s20 = sshll.u32 %s4161_s28, 4  ;;  %s699_s11 = scalar_lea.sflag [#allocation10], %s681_s19 }
 0x105   : > { %s693_s2 = scalar_lea.vmem [#allocation8], %s4169_s20  ;;  %s701_s12 = scalar_lea.vmem [#allocation9], %s4161_s28 }
 0x106   : > { %3671 = dma.done.wait (%p4650_p5), %s699_s11, 272  }
 0x107   : > { %3673 = vsyncadd (%p4650_p5), %s699_s11, 4294967024  ;;  %s710_s25 = scalar_lea.vmem [#allocation11], %s4169_s20  ;;  %s716_s26 = scalar_lea.sflag [#allocation13], %s681_s19 }
 0x108   : > { %s718_s3 = scalar_lea.vmem [#allocation12], %s4161_s28 }
 0x109   : > { %3675 = dma.done.wait (%p4650_p5), %s716_s26, 272  }
 0x10a   : > { %3677 = vsyncadd (%p4650_p5), %s716_s26, 4294967024  ;;  %s4184_s30 = scalar_lea.vmem [#allocation14], %s4169_s20  ;;  %s733_s13 = scalar_lea.sflag [#allocation16], %s4161_s28 }
 0x10b   : > { %s735_s23 = scalar_lea.vmem [#allocation15], %s4161_s28 }
 0x10c   : > { %3679 = dma.done.wait (%p4650_p5), %s733_s13, 16  }
 0x10d   : > { %3681 = vsyncadd (%p4650_p5), %s733_s13, 4294967280  ;;  %p826_p4 = scmp.lt.s32.totalorder %s3700_s24, 3  ;;  %s4651_s14 = sld [smem:[#allocation30_spill]] }
 0x10e   : > { %s4652_s15 = sld [smem:[#allocation34_spill]]  ;;  %p2863_p2 = scmp.ne.s32.totalorder %s3700_s24, 0 }
 0x10f   : > { %s827_s10 = scalar_select %p826_p4, %s3700_s24, 3 }
 0x110   : > { %840 = sbr.rel (%p2863_p2) target bundleno = 279 (0x117), region = 120  ;;  %v3722_v0 = vmov (!%p2863_p2), 0.0  }
 0x111   : > { %s2929_s7 = sshll.u32 %s827_s10, 4  ;;  %s2862_s5 = sshll.u32 %s827_s10, 2  ;;  %841 = vst [vmem:[#allocation2] sm:$0xff] (!%p2863_p2), %v3722_v0  ;;  %842 = vst [vmem:[#allocation2 + $0x8] sm:$0xff] (!%p2863_p2), %v3722_v0 }
 0x113   : > { %s830_s21 = scalar_lea.vmem %s4651_s14, %s2929_s7 }
 0x114   : > { %s4200_s11 = scalar_lea.vmem %s4652_s15, %s2862_s5 }
 0x117 PF: > { %v3324_v1 = vld [vmem:[%s693_s2] sm:$0xff]   ;;  %v3723_v2 = vmov 0.0   ;;  %v3326_v4 = vld [vmem:[%s693_s2 + $0x8] sm:$0xff]   ;;  %vm3724_vm0 = vmmov 0   ;;  %s4653_s13 = sld [smem:[#allocation29_spill]]  ;;  %vm875_vm1 = vcmask 261120  }
 0x118   : > { %3014 = vmatprep.subr.bf16.mxu1 %v3723_v2  ;;  %3006 = vmatprep.subr.bf16.mxu0 %v3723_v2  ;;  %v3325_v3 = vld [vmem:[%s830_s21] sm:$0xff]   ;;  %v3327_v7 = vld [vmem:[%s830_s21 + $0x8] sm:$0xff]   ;;  %vm1074_vm2 = vcmask 64512   ;;  %v843_v32 = vld [vmem:[#allocation3] sm:$0xff]  ;;  %v3726_v33 = vmov -1e+09  }
 0x119   : > { %3015 = vmatpush3.bf16.msra.mxu1 %v3324_v1  ;;  %3018 = vmatprep.mubr.msk.bf16.mxu1 %vm3724_vm0, %v3723_v2  ;;  %v2868_v9 = vld [vmem:[%s701_s12] ss:$0 sm:$0xff]  ;;  %v3328_v27 = vld [vmem:[%s710_s25] sm:$0xff]   ;;  %vm845_vm3 = vcmp.gt.f32.partialorder %v843_v32, 0.0  ;;  %s3727_s20 = smov 112   ;;  %vm1136_vm4 = vcmask 1043456  }
 0x11a   : > { %3016 = vmatprep.subr.bf16.mxu1 %v3723_v2  ;;  %3007 = vmatpush3.bf16.msra.mxu0 %v3325_v3  ;;  %v2864_v10 = vld [vmem:[%s684_s29] ss:$0 sm:$0xff]  ;;  %s3725_s29 = smov 120   ;;  %v4267_v34 = vsel %vm845_vm3, 0.0, %v3726_v33  ;;  %s3728_s2 = smov 104  }
 0x11b   : > { %3008 = vmatprep.subr.bf16.mxu0 %v3723_v2  ;;  %3010 = vmatprep.mubr.msk.bf16.mxu0 %vm3724_vm0, %v3723_v2  ;;  %v3329_v28 = vld [vmem:[%s710_s25 + $0x8] sm:$0xff]   ;;  %p2909_p0 = scmp.ne.s32.totalorder %s3700_s24, 3 }
 0x11c   : > { %v2872_v54 = vld [vmem:[%s718_s3] ss:$0 sm:$0xff]  ;;  %s4654_s25 = sld [smem:[#allocation36_spill]] (!%p2909_p0)  ;;  %vm3730_vm6 = vmmov (!%p2909_p0), 0   ;;  %s4656_s18 = sld [smem:[#allocation35_spill]] (!%p2909_p0) }
 0x11d   : > { %v849_v5 = vld [vmem:[%s4653_s13] sm:$0xff]  ;;  %v850_v6 = vld [vmem:[%s4653_s13 + $0x8] sm:$0xff]  ;;  %3017 = vmatpush3.bf16.msra.mxu1 %v3326_v4  ;;  %s4657_s28 = sld [smem:[#allocation37_spill]] (!%p2909_p0)  ;;  %s4659_s17 = sld [smem:[#allocation39_spill]] (!%p2909_p0) }
 0x11e   : > { %v851_v8 = vpack.c.bf16 %v850_v6, %v849_v5  ;;  %3009 = vmatpush3.bf16.msra.mxu0 %v3327_v7  ;;  %3030 = vmatprep.subr.bf16.mxu1 %v3723_v2  ;;  %v1069_v7 = vld [vmem:[%s4184_s30 + $0x4] sm:$0xf] }
 0x11f   : > { %3022 = vmatprep.subr.bf16.mxu0 %v3723_v2 }
 0x120   : > { %3019 = vmatmul.mubr.msk.bf16.vlgmr.msra.gmra.mrb[0].mxu1 %vm875_vm1, %v851_v8 }
 0x121   : > { %3011 = vmatmul.mubr.msk.bf16.vlgmr.msra.gmra.mrb[0].mxu0 %vm875_vm1, %v851_v8  ;;  %3032 = vmatprep.mubr.msk.bf16.mxu1 %vm3724_vm0, %v3723_v2 }
 0x122   : > { %3026 = vmatprep.mubr.msk.bf16.mxu0 %vm3724_vm0, %v3723_v2  ;;  %3023 = vmatpush3.bf16.msra.mxu0 %v3328_v27  ;;  %s4655_s3 = smov (!%p2909_p0), %s4654_s25 }
 0x123   : > { %3024 = vmatprep.subr.bf16.mxu0 %v3723_v2 }
 0x126   : > { %3025 = vmatpush3.bf16.msra.mxu0 %v3329_v28 }
 0x127   : > { %3036 = vmatprep.subr.bf16.mxu0 %v3723_v2 }
 0x129   : > { %3027 = vmatmul.mubr.msk.bf16.vlgmr.msra.gmra.mrb[4].mxu0 %vm875_vm1, %v851_v8  ;;  %v4297_v8 = vsel %vm1136_vm4, %v1069_v7, 0 }
 0x12a   : > { %3038 = vmatprep.mubr.msk.bf16.mxu0 %vm3724_vm0, %v3723_v2 }
 0x1f3   : > { %v979_v11 = vpop.f32.mrb[0].mxu1 }
 0x1f4   : > { %v980_v12 = vadd.f32 %v2868_v9, %v979_v11  ;;  %v3020_v13 = vpop.f32.mrb[1].mxu1  ;;  %v913_v14 = vpop.f32.mrb[0].mxu0 }
 0x1f5   : > { %v982_v15 = vpop.f32.mrb[2].mxu1  ;;  %v914_v16 = vadd.f32 %v2864_v10, %v913_v14  ;;  %v3012_v17 = vpop.f32.mrb[1].mxu0  ;;  %v1068_v13 = vld [vmem:[%s4184_s30] sm:$0xf] }
 0x1f6   : > { %v4233_v18 = vpack.c.bf16 %v980_v12, %v980_v12  ;;  %v4235_v19 = vadd.f32 %v2868_v9, %v982_v15  ;;  %v3021_v20 = vpop.f32.mrb[3].mxu1  ;;  %v916_v21 = vpop.f32.mrb[2].mxu0 }
 0x1f7   : > { %v920_v22 = vmul.f32 0.35355338, %v914_v16  ;;  %v4237_v23 = vadd.f32 %v2864_v10, %v916_v21  ;;  %v3013_v24 = vpop.f32.mrb[3].mxu0  ;;  %v4305_v16 = vsel %vm1136_vm4, %v1068_v13, 0 }
 0x1f8   : > { %1183 = vrot.lane.b32.xlu0 %v4233_v18, %s3725_s29  ;;  %v1079_v25 = vsel %vm1074_vm2, %v4233_v18, 0 }
 0x1f9   : > { %v4243_v26 = vpack.c.bf16 %v920_v22, %v920_v22  ;;  %3031 = vmatpush3.bf16.xpose.msra.mxu1 %v1079_v25 }
 0x1fa   : > { %3042 = vmatprep.subr.bf16.mxu1 %v3723_v2 }
 0x1fc   : > { %1181 = vrot.lane.b32.xlu0 %v4243_v26, %s3725_s29  ;;  %v1043_v50 = vpop.f32.mrb[4].mxu0 }
 0x1fd   : > { %v3028_v51 = vpop.f32.mrb[5].mxu0  ;;  %v1044_v55 = vadd.f32 %v2872_v54, %v1043_v50 }
 0x1fe   : > { %v1046_v56 = vpop.f32.mrb[6].mxu0 }
 0x1ff   : > { %v4276_v57 = vpack.c.bf16 %v1044_v55, %v1044_v55  ;;  %v3029_v58 = vpop.f32.mrb[7].mxu0  ;;  %v4278_v59 = vadd.f32 %v2872_v54, %v1046_v56 }
 0x200   : > { %3033 = vmatmul.mubr.msk.bf16.vlgmr.msra.gmra.mrb[4].mxu1 %vm1074_vm2, %v4243_v26 }
 0x201   : > { %3044 = vmatprep.mubr.msk.bf16.mxu1 %vm3724_vm0, %v3723_v2  ;;  %v1138_v60 = vsel %vm1136_vm4, %v4276_v57, 0 }
 0x202   : > { %3037 = vmatpush3.bf16.msra.mxu0 %v1138_v60 }
 0x203   : > { %3048 = vmatprep.subr.bf16.mxu0 %v3723_v2 }
 0x26a   : > { %v1184_v29 = vpop.permute.xlu0 %1183 }
 0x26b   : > { %v1189_v30 = vsel %vm1074_vm2, %v1184_v29, 0 }
 0x26c   : > { %3043 = vmatpush3.bf16.xpose.msra.mxu1 %v1189_v30 }
 0x26d   : > { %3054 = vmatprep.subr.bf16.mxu1 %v3723_v2 }
 0x26e   : > { %v1182_v31 = vpop.permute.xlu0 %1181 }
 0x273   : > { %3045 = vmatmul.mubr.msk.bf16.vlgmr.msra.gmra.mrb[8].mxu1 %vm1074_vm2, %v1182_v31 }
 0x274   : > { %3056 = vmatprep.mubr.msk.bf16.mxu1 %vm3724_vm0, %v3723_v2  ;;  %3055 = vmatpush3.bf16.msra.mxu1 %v4297_v8 }
 0x275   : > { %3066 = vmatprep.subr.bf16.mxu1 %v3723_v2 }
 0x2d3   : > { %v1115_v35 = vpop.f32.mrb[4].mxu1 }
 0x2d4   : > { %v1116_v36 = vadd.f32 %v1115_v35, %v4267_v34  ;;  %v3034_v37 = vpop.f32.mrb[5].mxu1 }
 0x2d5   : > { %v1118_v38 = vpop.f32.mrb[6].mxu1 }
 0x2d6   : > { %v3035_v39 = vpop.f32.mrb[7].mxu1  ;;  %v1121_v40 = vsel %vm1074_vm2, %v1116_v36, -inf }
 0x2d7   : > { %1122 = vmax.xlane.f32.xlu1 %v1121_v40 }
 0x346   : > { %v1225_v41 = vpop.f32.mrb[8].mxu1 }
 0x347   : > { %v1226_v42 = vadd.f32 %v1225_v41, %v4267_v34  ;;  %v3046_v43 = vpop.f32.mrb[9].mxu1 }
 0x348   : > { %v1228_v44 = vpop.f32.mrb[10].mxu1 }
 0x349   : > { %v3047_v45 = vpop.f32.mrb[11].mxu1  ;;  %v1231_v46 = vsel %vm1074_vm2, %v1226_v42, -inf }
 0x34a   : > { %1232 = vmax.xlane.f32.xlu1 %v1231_v46 }
 0x364   : > { %v1123_v47 = vpop.xlane.xlu1 %1122 }
 0x365   : > { %v1124_v48 = vsub.f32 %v1116_v36, %v1123_v47 }
 0x367   : > { %v1125_v49 = vmul.f32 1.442695, %v1124_v48 }
 0x369   : > { %3330 = vpow2.f32 %v1125_v49 }
 0x373   : > { %v3331_v52 = vpop.eup %3330 }
 0x374   : > { %v1127_v53 = vsel %vm1074_vm2, %v3331_v52, 0.0 }
 0x375   : > { %1128 = vadd.xlane.f32.xlu0 %v1127_v53 }
 0x38b   : > { %1446 = vrot.lane.b32.xlu0 %v4276_v57, %s3727_s20 }
 0x3d7   : > { %v1233_v61 = vpop.xlane.xlu1 %1232 }
 0x3d8   : > { %v1234_v62 = vsub.f32 %v1226_v42, %v1233_v61 }
 0x3da   : > { %v1235_v63 = vmul.f32 1.442695, %v1234_v62 }
 0x3dc   : > { %3332 = vpow2.f32 %v1235_v63 }
 0x3e6   : > { %v3333_v0 = vpop.eup %3332 }
 0x3e7   : > { %v1237_v1 = vsel %vm1074_vm2, %v3333_v0, 0.0 }
 0x3e8   : > { %1238 = vadd.xlane.f32.xlu1 %v1237_v1 }
 0x3f9   : > { %1243 = vrot.lane.b32.xlu1 %v4276_v57, %s3725_s29 }
 0x3fd   : > { %1386 = vrot.lane.b32.xlu1 %v4233_v18, %s3727_s20 }
 0x401   : > { %1384 = vrot.lane.b32.xlu1 %v4243_v26, %s3727_s20 }
 0x402   : > { %v1129_v3 = vpop.xlane.xlu0 %1128 }
 0x403   : > { %3334 = vrcp.f32 %v1129_v3 }
 0x406   : > { %v1447_v17 = vpop.permute.xlu0 %1446 }
 0x407   : > { %v1452_v25 = vsel %vm1136_vm4, %v1447_v17, 0 }
 0x40d   : > { %v3335_v4 = vpop.eup %3334 }
 0x40e   : > { %v1131_v5 = vmul.f32 %v3335_v4, %v3331_v52 }
 0x410   : > { %v1132_v6 = vpack.c.bf16 %v1131_v5, %v1131_v5 }
 0x412   : > { %3039 = vmatmul.mubr.msk.bf16.vlgmr.msra.gmra.mrb[8].mxu0 %vm1074_vm2, %v1132_v6 }
 0x413   : > { %3050 = vmatprep.mubr.msk.bf16.mxu0 %vm3724_vm0, %v3723_v2 }
 0x475   : > { %v1239_v9 = vpop.xlane.xlu1 %1238 }
 0x476   : > { %3336 = vrcp.f32 %v1239_v9 }
 0x479   : > { %v1244_v10 = vpop.permute.xlu1 %1243 }
 0x47a   : > { %v1249_v11 = vsel %vm1136_vm4, %v1244_v10, 0 }
 0x47b   : > { %3049 = vmatpush3.bf16.msra.mxu0 %v1249_v11 }
 0x47c   : > { %3060 = vmatprep.subr.bf16.mxu0 %v3723_v2 }
 0x47d   : > { %v1387_v28 = vpop.permute.xlu1 %1386 }
 0x47e   : > { %v1392_v35 = vsel %vm1074_vm2, %v1387_v28, 0  ;;  %v1071_v28 = vld [vmem:[%s4184_s30 + $0xc] sm:$0xf] }
 0x480   : > { %v3337_v12 = vpop.eup %3336 }
 0x481   : > { %v1241_v14 = vmul.f32 %v3337_v12, %v3333_v0  ;;  %v1385_v37 = vpop.permute.xlu1 %1384 }
 0x483   : > { %v1242_v15 = vpack.c.bf16 %v1241_v14, %v1241_v14 }
 0x485   : > { %3051 = vmatmul.mubr.msk.bf16.vlgmr.msra.gmra.mrb[12].mxu0 %vm1074_vm2, %v1242_v15 }
 0x486   : > { %3061 = vmatpush3.bf16.msra.mxu0 %v4305_v16  ;;  %3062 = vmatprep.mubr.msk.bf16.mxu0 %vm3724_vm0, %v3723_v2 }
 0x487   : > { %3072 = vmatprep.subr.bf16.mxu0 %v3723_v2 }
 0x4e5   : > { %v1174_v20 = vpop.f32.mrb[8].mxu0 }
 0x4e6   : > { %v1180_v21 = vpack.c.bf16 %v1174_v20, %v1174_v20  ;;  %v3040_v22 = vpop.f32.mrb[9].mxu0 }
 0x4e7   : > { %v1177_v24 = vpop.f32.mrb[10].mxu0 }
 0x4e8   : > { %v3041_v27 = vpop.f32.mrb[11].mxu0  ;;  %3063 = vmatmul.mubr.msk.bf16.vlgmr.msra.gmra.mrb[16].mxu0 %vm1074_vm2, %v1180_v21 }
 0x4e9   : > { %3073 = vmatpush3.bf16.msra.mxu0 %v1452_v25  ;;  %3074 = vmatprep.mubr.msk.bf16.mxu0 %vm3724_vm0, %v3723_v2  ;;  %v921_v25 = vmul.f32 0.35355338, %v4237_v23 }
 0x4ea   : > { %3084 = vmatprep.subr.bf16.mxu0 %v3723_v2 }
 0x4eb   : > { %v4363_v27 = vpack.c.bf16 %v921_v25, %v921_v25  ;;  %v1707_v25 = vld [vmem:[#allocation2] sm:$0xff] }
 0x558   : > { %v1285_v29 = vpop.f32.mrb[12].mxu0 }
 0x559   : > { %v1291_v30 = vpack.c.bf16 %v1285_v29, %v1285_v29  ;;  %v3052_v31 = vpop.f32.mrb[13].mxu0  ;;  %v4369_v29 = vsel %vm1136_vm4, %v1071_v28, 0 }
 0x55a   : > { %v1288_v32 = vpop.f32.mrb[14].mxu0 }
 0x55b   : > { %v3053_v36 = vpop.f32.mrb[15].mxu0  ;;  %3057 = vmatmul.mubr.msk.bf16.vlgmr.msra.gmra.mrb[12].mxu1 %vm1074_vm2, %v1291_v30 }
 0x55c   : > { %3067 = vmatpush3.bf16.xpose.msra.mxu1 %v1392_v35  ;;  %3068 = vmatprep.mubr.msk.bf16.mxu1 %vm3724_vm0, %v3723_v2 }
 0x55d   : > { %3078 = vmatprep.subr.bf16.mxu1 %v3723_v2 }
 0x563   : > { %3069 = vmatmul.mubr.msk.bf16.vlgmr.msra.gmra.mrb[16].mxu1 %vm1074_vm2, %v1385_v37 }
 0x564   : > { %3080 = vmatprep.mubr.msk.bf16.mxu1 %vm3724_vm0, %v3723_v2 }
 0x5bb   : > { %v1378_v38 = vpop.f32.mrb[16].mxu0 }
 0x5bc   : > { %v3064_v39 = vpop.f32.mrb[17].mxu0 }
 0x5bd   : > { %v1381_v40 = vpop.f32.mrb[18].mxu0 }
 0x5be   : > { %v3065_v41 = vpop.f32.mrb[19].mxu0 }
 0x62e   : > { %v1332_v42 = vpop.f32.mrb[12].mxu1 }
 0x62f   : > { %v4325_v43 = vadd.f32 %v1378_v38, %v1332_v42  ;;  %v3058_v44 = vpop.f32.mrb[13].mxu1 }
 0x630   : > { %v1335_v45 = vpop.f32.mrb[14].mxu1 }
 0x631   : > { %v3059_v46 = vpop.f32.mrb[15].mxu1 }
 0x636   : > { %v1428_v47 = vpop.f32.mrb[16].mxu1 }
 0x637   : > { %v1429_v48 = vadd.f32 %v1428_v47, %v4267_v34  ;;  %v3070_v49 = vpop.f32.mrb[17].mxu1 }
 0x638   : > { %v1431_v50 = vpop.f32.mrb[18].mxu1  ;;  %v1073_v49 = vld [vmem:[%s4200_s11] sm:$0xf] }
 0x639   : > { %v3071_v51 = vpop.f32.mrb[19].mxu1  ;;  %v1434_v52 = vsel %vm1074_vm2, %v1429_v48, -inf  ;;  %v4398_v50 = vsel %vm1136_vm4, %v1073_v49, 0 }
 0x63a   : > { %1435 = vmax.xlane.f32.xlu1 %v1434_v52  ;;  %v4404_v51 = vld [vmem:[%s735_s23] ss:$0 sm:$0xff] }
 0x6c7   : > { %v1436_v53 = vpop.xlane.xlu1 %1435 }
 0x6c8   : > { %v1437_v54 = vsub.f32 %v1429_v48, %v1436_v53  ;;  %v844_v53 = vld [vmem:[#allocation3 + $0x8] sm:$0xff] }
 0x6c9   : > { %vm846_vm5 = vcmp.gt.f32.partialorder %v844_v53, 0.0 }
 0x6ca   : > { %v1438_v55 = vmul.f32 1.442695, %v1437_v54 }
 0x6cc   : > { %3338 = vpow2.f32 %v1438_v55 }
 0x6d6   : > { %v3339_v56 = vpop.eup %3338 }
 0x6d7   : > { %v1440_v58 = vsel %vm1074_vm2, %v3339_v56, 0.0 }
 0x6d8   : > { %1441 = vadd.xlane.f32.xlu0 %v1440_v58 }
 0x6ee   : > { %1544 = vrot.lane.b32.xlu0 %v4233_v18, %s3728_s2 }
 0x6f2   : > { %1542 = vrot.lane.b32.xlu0 %v4243_v26, %s3728_s2  ;;  %v1070_v26 = vld [vmem:[%s4184_s30 + $0x8] sm:$0xf]  ;;  %s4658_s30 = sld [smem:[#allocation38_spill]] (!%p2909_p0) }
 0x6f3   : > { %v4344_v3 = vsel %vm1136_vm4, %v1070_v26, 0 }
 0x6f4   : > { %3079 = vmatpush3.bf16.msra.mxu1 %v4344_v3 }
 0x6f5   : > { %3090 = vmatprep.subr.bf16.mxu1 %v3723_v2 }
 0x765   : > { %v1442_v60 = vpop.xlane.xlu0 %1441 }
 0x766   : > { %3340 = vrcp.f32 %v1442_v60 }
 0x769   : > { %v1545_v63 = vpop.permute.xlu0 %1544 }
 0x76a   : > { %v1550_v1 = vsel %vm1074_vm2, %v1545_v63, 0 }
 0x76d   : > { %v1543_v18 = vpop.permute.xlu0 %1542 }
 0x770   : > { %v3341_v61 = vpop.eup %3340 }
 0x771   : > { %v1444_v62 = vmul.f32 %v3341_v61, %v3339_v56  ;;  %v4408_v56 = vpack.c.bf16 %v4278_v59, %v4278_v59 }
 0x773   : > { %v1445_v0 = vpack.c.bf16 %v1444_v62, %v1444_v62  ;;  %v4412_v62 = vsel %vm846_vm5, 0.0, %v3726_v33  ;;  %v1819_v63 = vsel %vm1136_vm4, %v4408_v56, 0 }
 0x775   : > { %3075 = vmatmul.mubr.msk.bf16.vlgmr.msra.gmra.mrb[20].mxu0 %vm1074_vm2, %v1445_v0 }
 0x776   : > { %3085 = vmatpush3.bf16.xpose.msra.mxu0 %v1550_v1  ;;  %3086 = vmatprep.mubr.msk.bf16.mxu0 %vm3724_vm0, %v3723_v2 }
 0x777   : > { %3096 = vmatprep.subr.bf16.mxu0 %v3723_v2 }
 0x77d   : > { %3087 = vmatmul.mubr.msk.bf16.vlgmr.msra.gmra.mrb[24].mxu0 %vm1074_vm2, %v1543_v18 }
 0x77e   : > { %3098 = vmatprep.mubr.msk.bf16.mxu0 %vm3724_vm0, %v3723_v2  ;;  %3097 = vmatpush3.bf16.msra.mxu0 %v4369_v29 }
 0x77f   : > { %3108 = vmatprep.subr.bf16.mxu0 %v3723_v2 }
 0x848   : > { %v1488_v4 = vpop.f32.mrb[20].mxu0 }
 0x849   : > { %v1494_v5 = vpack.c.bf16 %v1488_v4, %v1488_v4  ;;  %v3076_v6 = vpop.f32.mrb[21].mxu0 }
 0x84a   : > { %v1491_v7 = vpop.f32.mrb[22].mxu0 }
 0x84b   : > { %v3077_v9 = vpop.f32.mrb[23].mxu0  ;;  %3081 = vmatmul.mubr.msk.bf16.vlgmr.msra.gmra.mrb[20].mxu1 %vm1074_vm2, %v1494_v5 }
 0x84c   : > { %3092 = vmatprep.mubr.msk.bf16.mxu1 %vm3724_vm0, %v3723_v2 }
 0x850   : > { %v1586_v10 = vpop.f32.mrb[24].mxu0 }
 0x851   : > { %v1587_v11 = vadd.f32 %v1586_v10, %v4267_v34  ;;  %v3088_v12 = vpop.f32.mrb[25].mxu0  ;;  %v4358_v34 = vpack.c.bf16 %v4235_v19, %v4235_v19 }
 0x852   : > { %v1589_v13 = vpop.f32.mrb[26].mxu0 }
 0x853   : > { %v3089_v14 = vpop.f32.mrb[27].mxu0  ;;  %v1592_v15 = vsel %vm1074_vm2, %v1587_v11, -inf  ;;  %v1761_v45 = vsel %vm1074_vm2, %v4358_v34, 0 }
 0x854   : > { %1593 = vmax.xlane.f32.xlu0 %v1592_v15 }
 0x8e1   : > { %v1594_v17 = vpop.xlane.xlu0 %1593 }
 0x8e2   : > { %v1595_v20 = vsub.f32 %v1587_v11, %v1594_v17 }
 0x8e4   : > { %v1596_v21 = vmul.f32 1.442695, %v1595_v20 }
 0x8e6   : > { %3342 = vpow2.f32 %v1596_v21 }
 0x8f0   : > { %v3343_v22 = vpop.eup %3342 }
 0x8f1   : > { %v1598_v24 = vsel %vm1074_vm2, %v3343_v22, 0.0 }
 0x8f2   : > { %1599 = vadd.xlane.f32.xlu1 %v1598_v24 }
 0x903   : > { %1604 = vrot.lane.b32.xlu1 %v4276_v57, %s3728_s2 }
 0x907   : > { %1864 = vrot.lane.b32.xlu1 %v4358_v34, %s3725_s29 }
 0x90b   : > { %1862 = vrot.lane.b32.xlu1 %v4363_v27, %s3725_s29 }
 0x91e   : > { %v1535_v19 = vpop.f32.mrb[20].mxu1 }
 0x91f   : > { %v1541_v57 = vadd.f32 %v1535_v19, %v4325_v43  ;;  %v3082_v23 = vpop.f32.mrb[21].mxu1 }
 0x920   : > { %v1538_v30 = vpop.f32.mrb[22].mxu1 }
 0x921   : > { %v3083_v31 = vpop.f32.mrb[23].mxu1 }
 0x97f   : > { %v1600_v32 = vpop.xlane.xlu1 %1599 }
 0x980   : > { %3344 = vrcp.f32 %v1600_v32 }
 0x983   : > { %v1605_v35 = vpop.permute.xlu1 %1604 }
 0x984   : > { %v1610_v36 = vsel %vm1136_vm4, %v1605_v35, 0 }
 0x985   : > { %3091 = vmatpush3.bf16.msra.mxu1 %v1610_v36 }
 0x986   : > { %3102 = vmatprep.subr.bf16.mxu1 %v3723_v2 }
 0x987   : > { %v1865_v46 = vpop.permute.xlu1 %1864 }
 0x988   : > { %v1870_v47 = vsel %vm1074_vm2, %v1865_v46, 0 }
 0x98a   : > { %v3345_v37 = vpop.eup %3344 }
 0x98b   : > { %v1602_v38 = vmul.f32 %v3345_v37, %v3343_v22  ;;  %v1863_v48 = vpop.permute.xlu1 %1862 }
 0x98d   : > { %v1603_v39 = vpack.c.bf16 %v1602_v38, %v1602_v38 }
 0x98f   : > { %3093 = vmatmul.mubr.msk.bf16.vlgmr.msra.gmra.mrb[24].mxu1 %vm1074_vm2, %v1603_v39 }
 0x990   : > { %3104 = vmatprep.mubr.msk.bf16.mxu1 %vm3724_vm0, %v3723_v2  ;;  %3103 = vmatpush3.bf16.msra.mxu1 %v4398_v50 }
 0x991   : > { %3114 = vmatprep.subr.bf16.mxu1 %v3723_v2 }
 0xa62   : > { %v1646_v40 = vpop.f32.mrb[24].mxu1 }
 0xa63   : > { %v1652_v41 = vpack.c.bf16 %v1646_v40, %v1646_v40  ;;  %v3094_v42 = vpop.f32.mrb[25].mxu1 }
 0xa64   : > { %v1649_v43 = vpop.f32.mrb[26].mxu1 }
 0xa65   : > { %v3095_v44 = vpop.f32.mrb[27].mxu1  ;;  %3099 = vmatmul.mubr.msk.bf16.vlgmr.msra.gmra.mrb[28].mxu0 %vm1074_vm2, %v1652_v41 }
 0xa66   : > { %3109 = vmatpush3.bf16.xpose.msra.mxu0 %v1761_v45  ;;  %3110 = vmatprep.mubr.msk.bf16.mxu0 %vm3724_vm0, %v3723_v2 }
 0xa67   : > { %3120 = vmatprep.subr.bf16.mxu0 %v3723_v2 }
 0xa6d   : > { %3111 = vmatmul.mubr.msk.bf16.vlgmr.msra.gmra.mrb[32].mxu0 %vm1074_vm2, %v4363_v27 }
 0xa6e   : > { %3121 = vmatpush3.bf16.xpose.msra.mxu0 %v1870_v47  ;;  %3122 = vmatprep.mubr.msk.bf16.mxu0 %vm3724_vm0, %v3723_v2 }
 0xa6f   : > { %3132 = vmatprep.subr.bf16.mxu0 %v3723_v2 }
 0xa75   : > { %3123 = vmatmul.mubr.msk.bf16.vlgmr.msra.gmra.mrb[36].mxu0 %vm1074_vm2, %v1863_v48 }
 0xa76   : > { %3133 = vmatpush3.bf16.msra.mxu0 %v4297_v8  ;;  %3134 = vmatprep.mubr.msk.bf16.mxu0 %vm3724_vm0, %v3723_v2 }
 0xa77   : > { %3144 = vmatprep.subr.bf16.mxu0 %v3723_v2 }
 0xb38   : > { %v1693_v52 = vpop.f32.mrb[28].mxu0 }
 0xb39   : > { %v1699_v54 = vadd.f32 %v1693_v52, %v1541_v57  ;;  %v3100_v8 = vpop.f32.mrb[29].mxu0 }
 0xb3a   : > { %v1696_v55 = vpop.f32.mrb[30].mxu0 }
 0xb3b   : > { %v1706_v58 = vadd.f32 %v4404_v51, %v1699_v54  ;;  %v3101_v60 = vpop.f32.mrb[31].mxu0 }
 0xb3d   : > { %v1708_v61 = vpack.c.bf16 %v1706_v58, %v1706_v58 }
 0xb3f   : > { %3105 = vmatmul.mubr.msk.bf16.vlgmr.msra.gmra.mrb[28].mxu1 %vm1074_vm2, %v1708_v61 }
 0xb40   : > { %3115 = vmatpush3.bf16.msra.mxu1 %v1819_v63  ;;  %v1797_v0 = vpop.f32.mrb[32].mxu0  ;;  %3116 = vmatprep.mubr.msk.bf16.mxu1 %vm3724_vm0, %v3723_v2 }
 0xb41   : > { %v1798_v59 = vadd.f32 %v1797_v0, %v4412_v62  ;;  %v3112_v1 = vpop.f32.mrb[33].mxu0  ;;  %3126 = vmatprep.subr.bf16.mxu1 %v3723_v2 }
 0xb42   : > { %v1800_v18 = vpop.f32.mrb[34].mxu0 }
 0xb43   : > { %v3113_v26 = vpop.f32.mrb[35].mxu0  ;;  %v1803_v33 = vsel %vm1074_vm2, %v1798_v59, -inf }
 0xb44   : > { %1804 = vmax.xlane.f32.xlu1 %v1803_v33 }
 0xb48   : > { %v1906_v4 = vpop.f32.mrb[36].mxu0 }
 0xb49   : > { %v1907_v5 = vadd.f32 %v1906_v4, %v4412_v62  ;;  %v3124_v6 = vpop.f32.mrb[37].mxu0 }
 0xb4a   : > { %v1909_v7 = vpop.f32.mrb[38].mxu0 }
 0xb4b   : > { %v3125_v9 = vpop.f32.mrb[39].mxu0  ;;  %v1912_v10 = vsel %vm1074_vm2, %v1907_v5, -inf }
 0xb4c   : > { %1913 = vmax.xlane.f32.xlu0 %v1912_v10 }
 0xb55   : > { %2059 = vrot.lane.b32.xlu1 %v4363_v27, %s3727_s20 }
 0xbd1   : > { %v1805_v11 = vpop.xlane.xlu1 %1804 }
 0xbd2   : > { %v1806_v12 = vsub.f32 %v1798_v59, %v1805_v11 }
 0xbd4   : > { %v1807_v13 = vmul.f32 1.442695, %v1806_v12 }
 0xbd5   : > { %v2060_v55 = vpop.permute.xlu1 %2059 }
 0xbd6   : > { %3346 = vpow2.f32 %v1807_v13 }
 0xbd9   : > { %v1914_v14 = vpop.xlane.xlu0 %1913 }
 0xbda   : > { %v1915_v15 = vsub.f32 %v1907_v5, %v1914_v14 }
 0xbdc   : > { %v1916_v17 = vmul.f32 1.442695, %v1915_v15 }
 0xbde   : > { %3348 = vpow2.f32 %v1916_v17 }
 0xbe0   : > { %v3347_v20 = vpop.eup %3346 }
 0xbe1   : > { %v1809_v21 = vsel %vm1074_vm2, %v3347_v20, 0.0 }
 0xbe2   : > { %1810 = vadd.xlane.f32.xlu0 %v1809_v21 }
 0xbe8   : > { %v3349_v22 = vpop.eup %3348 }
 0xbe9   : > { %v1918_v24 = vsel %vm1074_vm2, %v3349_v22, 0.0 }
 0xbea   : > { %1919 = vadd.xlane.f32.xlu0 %v1918_v24 }
 0xc00   : > { %1924 = vrot.lane.b32.xlu0 %v4408_v56, %s3725_s29 }
 0xc04   : > { %2061 = vrot.lane.b32.xlu0 %v4358_v34, %s3727_s20 }
 0xc12   : > { %v1749_v28 = vpop.f32.mrb[28].mxu1 }
 0xc13   : > { %v1755_v19 = vadd.f32 %v1749_v28, %v1707_v25  ;;  %v3106_v57 = vpop.f32.mrb[29].mxu1 }
 0xc14   : > { %v1752_v23 = vpop.f32.mrb[30].mxu1 }
 0xc15   : > { %1756 = vst [vmem:[#allocation2] sm:$0xff] %v1755_v19  ;;  %v3107_v30 = vpop.f32.mrb[31].mxu1 }
 0xc6f   : > { %v1811_v31 = vpop.xlane.xlu0 %1810 }
 0xc70   : > { %3350 = vrcp.f32 %v1811_v31 }
 0xc77   : > { %v1920_v32 = vpop.xlane.xlu0 %1919 }
 0xc78   : > { %3352 = vrcp.f32 %v1920_v32 }
 0xc7a   : > { %v3351_v35 = vpop.eup %3350 }
 0xc7b   : > { %v1813_v36 = vmul.f32 %v3351_v35, %v3347_v20  ;;  %v1925_v37 = vpop.permute.xlu0 %1924 }
 0xc7c   : > { %v1930_v39 = vsel %vm1136_vm4, %v1925_v37, 0 }
 0xc7d   : > { %v1814_v38 = vpack.c.bf16 %v1813_v36, %v1813_v36 }
 0xc7f   : > { %3117 = vmatmul.mubr.msk.bf16.vlgmr.msra.gmra.mrb[32].mxu1 %vm1074_vm2, %v1814_v38  ;;  %v2062_v48 = vpop.permute.xlu0 %2061 }
 0xc80   : > { %3127 = vmatpush3.bf16.msra.mxu1 %v1930_v39  ;;  %3128 = vmatprep.mubr.msk.bf16.mxu1 %vm3724_vm0, %v3723_v2  ;;  %v2067_v54 = vsel %vm1074_vm2, %v2062_v48, 0 }
 0xc81   : > { %3138 = vmatprep.subr.bf16.mxu1 %v3723_v2 }
 0xc82   : > { %v3353_v40 = vpop.eup %3352 }
 0xc83   : > { %v1922_v41 = vmul.f32 %v3353_v40, %v3349_v22 }
 0xc85   : > { %v1923_v42 = vpack.c.bf16 %v1922_v41, %v1922_v41 }
 0xc87   : > { %3129 = vmatmul.mubr.msk.bf16.vlgmr.msra.gmra.mrb[36].mxu1 %vm1074_vm2, %v1923_v42 }
 0xc88   : > { %3139 = vmatpush3.bf16.msra.mxu1 %v4305_v16  ;;  %3140 = vmatprep.mubr.msk.bf16.mxu1 %vm3724_vm0, %v3723_v2 }
 0xc89   : > { %3150 = vmatprep.subr.bf16.mxu1 %v3723_v2 }
 0xd52   : > { %v1855_v43 = vpop.f32.mrb[32].mxu1 }
 0xd53   : > { %v1861_v44 = vpack.c.bf16 %v1855_v43, %v1855_v43  ;;  %v3118_v45 = vpop.f32.mrb[33].mxu1 }
 0xd54   : > { %v1858_v46 = vpop.f32.mrb[34].mxu1 }
 0xd55   : > { %v3119_v47 = vpop.f32.mrb[35].mxu1  ;;  %3141 = vmatmul.mubr.msk.bf16.vlgmr.msra.gmra.mrb[40].mxu1 %vm1074_vm2, %v1861_v44 }
 0xd56   : > { %3152 = vmatprep.mubr.msk.bf16.mxu1 %vm3724_vm0, %v3723_v2 }
 0xd5a   : > { %v1966_v49 = vpop.f32.mrb[36].mxu1 }
 0xd5b   : > { %v1972_v52 = vpack.c.bf16 %v1966_v49, %v1966_v49  ;;  %v3130_v53 = vpop.f32.mrb[37].mxu1 }
 0xd5c   : > { %v1969_v16 = vpop.f32.mrb[38].mxu1 }
 0xd5d   : > { %v3131_v8 = vpop.f32.mrb[39].mxu1  ;;  %3135 = vmatmul.mubr.msk.bf16.vlgmr.msra.gmra.mrb[40].mxu0 %vm1074_vm2, %v1972_v52 }
 0xd5e   : > { %3145 = vmatpush3.bf16.xpose.msra.mxu0 %v2067_v54  ;;  %3146 = vmatprep.mubr.msk.bf16.mxu0 %vm3724_vm0, %v3723_v2 }
 0xd5f   : > { %3156 = vmatprep.subr.bf16.mxu0 %v3723_v2 }
 0xd65   : > { %3147 = vmatmul.mubr.msk.bf16.vlgmr.msra.gmra.mrb[44].mxu0 %vm1074_vm2, %v2060_v55 }
 0xd66   : > { %3157 = vmatpush3.bf16.msra.mxu0 %v4344_v3  ;;  %3158 = vmatprep.mubr.msk.bf16.mxu0 %vm3724_vm0, %v3723_v2 }
 0xd67   : > { %3168 = vmatprep.subr.bf16.mxu0 %v3723_v2 }
 0xe28   : > { %v2053_v58 = vpop.f32.mrb[40].mxu1 }
 0xe29   : > { %v3142_v60 = vpop.f32.mrb[41].mxu1 }
 0xe2a   : > { %v2056_v61 = vpop.f32.mrb[42].mxu1 }
 0xe2b   : > { %v3143_v63 = vpop.f32.mrb[43].mxu1 }
 0xe30   : > { %v2010_v0 = vpop.f32.mrb[40].mxu0 }
 0xe31   : > { %v4455_v59 = vadd.f32 %v2053_v58, %v2010_v0  ;;  %v3136_v1 = vpop.f32.mrb[41].mxu0 }
 0xe32   : > { %v2013_v18 = vpop.f32.mrb[42].mxu0 }
 0xe33   : > { %v3137_v26 = vpop.f32.mrb[43].mxu0 }
 0xe38   : > { %v2103_v33 = vpop.f32.mrb[44].mxu0 }
 0xe39   : > { %v2104_v4 = vadd.f32 %v2103_v33, %v4412_v62  ;;  %v3148_v5 = vpop.f32.mrb[45].mxu0 }
 0xe3a   : > { %v2106_v3 = vpop.f32.mrb[46].mxu0  ;;  %v3362_v5 = vld [vmem:[%s4654_s25] sm:$0xff] (!%p2909_p0)  }
 0xe3b   : > { %v3149_v6 = vpop.f32.mrb[47].mxu0  ;;  %v2109_v7 = vsel %vm1074_vm2, %v2104_v4, -inf  ;;  %v3729_v3 = vmov (!%p2909_p0), 0.0  }
 0xe3c   : > { %2110 = vmax.xlane.f32.xlu0 %v2109_v7  ;;  %v3364_v6 = vld [vmem:[%s4655_s3 + $0x10] sm:$0xff] (!%p2909_p0)   ;;  %v3365_v7 = vld [vmem:[%s4655_s3 + $0x18] sm:$0xff] (!%p2909_p0)  }
 0xe52   : > { %2121 = vrot.lane.b32.xlu0 %v4408_v56, %s3727_s20 }
 0xe56   : > { %2214 = vrot.lane.b32.xlu0 %v4363_v27, %s3728_s2 }
 0xec9   : > { %v2111_v9 = vpop.xlane.xlu0 %2110 }
 0xeca   : > { %v2112_v10 = vsub.f32 %v2104_v4, %v2111_v9  ;;  %v3366_v9 = vld [vmem:[%s4655_s3 + $0x20] sm:$0xff] (!%p2909_p0)  }
 0xecc   : > { %v2113_v11 = vmul.f32 1.442695, %v2112_v10  ;;  %v3367_v10 = vld [vmem:[%s4655_s3 + $0x28] sm:$0xff] (!%p2909_p0)  }
 0xecd   : > { %v2122_v12 = vpop.permute.xlu0 %2121 }
 0xece   : > { %3354 = vpow2.f32 %v2113_v11  ;;  %v2127_v13 = vsel %vm1136_vm4, %v2122_v12, 0  ;;  %v2421_v11 = vld [vmem:[#allocation2] sm:$0xff] (!%p2909_p0) }
 0xecf   : > { %3151 = vmatpush3.bf16.msra.mxu1 %v2127_v13  ;;  %v2910_v13 = vld [vmem:[%s4656_s18] ss:$0 sm:$0xff] (!%p2909_p0) }
 0xed0   : > { %3162 = vmatprep.subr.bf16.mxu1 %v3723_v2 }
 0xed1   : > { %v2215_v25 = vpop.permute.xlu0 %2214 }
 0xed8   : > { %v3355_v14 = vpop.eup %3354 }
 0xed9   : > { %v2115_v15 = vsel %vm1074_vm2, %v3355_v14, 0.0 }
 0xeda   : > { %2116 = vadd.xlane.f32.xlu1 %v2115_v15 }
 0xeeb   : > { %2216 = vrot.lane.b32.xlu1 %v4358_v34, %s3728_s2 }
 0xf67   : > { %v2117_v17 = vpop.xlane.xlu1 %2116 }
 0xf68   : > { %3356 = vrcp.f32 %v2117_v17  ;;  %v3368_v17 = vld [vmem:[%s4655_s3 + $0x30] sm:$0xff] (!%p2909_p0)  }
 0xf6b   : > { %v2217_v21 = vpop.permute.xlu1 %2216 }
 0xf6c   : > { %v2222_v24 = vsel %vm1074_vm2, %v2217_v21, 0  ;;  %v3369_v21 = vld [vmem:[%s4655_s3 + $0x38] sm:$0xff] (!%p2909_p0)  }
 0xf72   : > { %v3357_v27 = vpop.eup %3356 }
 0xf73   : > { %v2119_v20 = vmul.f32 %v3357_v27, %v3355_v14  ;;  %v2430_v14 = vadd.f32 (!%p2909_p0), %v2910_v13, %v2421_v11 }
 0xf75   : > { %v2120_v22 = vpack.c.bf16 %v2119_v20, %v2119_v20  ;;  %v2432_v27 = vmax.f32 (!%p2909_p0), %v2430_v14, 0.0 }
 0xf77   : > { %3153 = vmatmul.mubr.msk.bf16.vlgmr.msra.gmra.mrb[44].mxu1 %vm1074_vm2, %v2120_v22 }
 0xf78   : > { %3163 = vmatpush3.bf16.xpose.msra.mxu1 %v2222_v24  ;;  %3164 = vmatprep.mubr.msk.bf16.mxu1 %vm3724_vm0, %v3723_v2  ;;  %v2911_v24 = vld [vmem:[%s4657_s28] ss:$0 sm:$0xff] (!%p2909_p0) }
 0xf79   : > { %3174 = vmatprep.subr.bf16.mxu1 %v3723_v2 }
 0xf7f   : > { %3165 = vmatmul.mubr.msk.bf16.vlgmr.msra.gmra.mrb[48].mxu1 %vm1074_vm2, %v2215_v25 }
 0xf80   : > { %3175 = vmatpush3.bf16.msra.mxu1 %v4369_v29  ;;  %3176 = vmatprep.mubr.msk.bf16.mxu1 %vm3724_vm0, %v3723_v2 }
0x104a   : > { %v2163_v34 = vpop.f32.mrb[44].mxu1 }
0x104b   : > { %v2169_v28 = vpack.c.bf16 %v2163_v34, %v2163_v34  ;;  %v3154_v19 = vpop.f32.mrb[45].mxu1 }
0x104c   : > { %v2166_v57 = vpop.f32.mrb[46].mxu1 }
0x104d   : > { %v3155_v23 = vpop.f32.mrb[47].mxu1  ;;  %3159 = vmatmul.mubr.msk.bf16.vlgmr.msra.gmra.mrb[48].mxu0 %vm1074_vm2, %v2169_v28 }
0x104e   : > { %3170 = vmatprep.mubr.msk.bf16.mxu0 %vm3724_vm0, %v3723_v2 }
0x1052   : > { %v2258_v30 = vpop.f32.mrb[48].mxu1 }
0x1053   : > { %v2259_v31 = vadd.f32 %v2258_v30, %v4412_v62  ;;  %v3166_v32 = vpop.f32.mrb[49].mxu1 }
0x1054   : > { %v2261_v35 = vpop.f32.mrb[50].mxu1 }
0x1055   : > { %v3167_v36 = vpop.f32.mrb[51].mxu1  ;;  %v2264_v29 = vsel %vm1074_vm2, %v2259_v31, -inf }
0x1056   : > { %2265 = vmax.xlane.f32.xlu0 %v2264_v29 }
0x106c   : > { %2276 = vrot.lane.b32.xlu0 %v4408_v56, %s3728_s2 }
0x10e3   : > { %v2266_v37 = vpop.xlane.xlu0 %2265 }
0x10e4   : > { %v2267_v38 = vsub.f32 %v2259_v31, %v2266_v37 }
0x10e6   : > { %v2268_v39 = vmul.f32 1.442695, %v2267_v38 }
0x10e7   : > { %v2277_v40 = vpop.permute.xlu0 %2276 }
0x10e8   : > { %3358 = vpow2.f32 %v2268_v39  ;;  %v2282_v41 = vsel %vm1136_vm4, %v2277_v40, 0 }
0x10e9   : > { %3169 = vmatpush3.bf16.msra.mxu0 %v2282_v41 }
0x10ea   : > { %3180 = vmatprep.subr.bf16.mxu0 %v3723_v2 }
0x10f2   : > { %v3359_v62 = vpop.eup %3358 }
0x10f3   : > { %v2270_v42 = vsel %vm1074_vm2, %v3359_v62, 0.0 }
0x10f4   : > { %2271 = vadd.xlane.f32.xlu1 %v2270_v42 }
0x1120   : > { %v2207_v43 = vpop.f32.mrb[48].mxu0 }
0x1121   : > { %v2213_v44 = vadd.f32 %v2207_v43, %v4455_v59  ;;  %v3160_v45 = vpop.f32.mrb[49].mxu0 }
0x1122   : > { %v2210_v46 = vpop.f32.mrb[50].mxu0 }
0x1123   : > { %v3161_v56 = vpop.f32.mrb[51].mxu0 }
0x1181   : > { %v2272_v47 = vpop.xlane.xlu1 %2271 }
0x1182   : > { %3360 = vrcp.f32 %v2272_v47 }
0x118c   : > { %v3361_v48 = vpop.eup %3360 }
0x118d   : > { %v2274_v49 = vmul.f32 %v3361_v48, %v3359_v62  ;;  %v2920_v48 = vld [vmem:[%s4658_s30] ss:$0 sm:$0xff] (!%p2909_p0) }
0x118f   : > { %v2275_v52 = vpack.c.bf16 %v2274_v49, %v2274_v49 }
0x1191   : > { %3171 = vmatmul.mubr.msk.bf16.vlgmr.msra.gmra.mrb[52].mxu0 %vm1074_vm2, %v2275_v52  ;;  %v2921_v52 = vld [vmem:[%s4659_s17] ss:$0 sm:$0xff] (!%p2909_p0) }
0x1192   : > { %3181 = vmatpush3.bf16.msra.mxu0 %v4398_v50  ;;  %3182 = vmatprep.mubr.msk.bf16.mxu0 %vm3724_vm0, %v3723_v2  ;;  %v2370_v50 = vld [vmem:[#allocation2 + $0x8] sm:$0xff] }
0x1193   : > { %3186 = vmatprep.subr.bf16.mxu0 (!%p2909_p0), %v3729_v3 }
0x1264   : > { %v2318_v53 = vpop.f32.mrb[52].mxu0 }
0x1265   : > { %v2324_v16 = vpack.c.bf16 %v2318_v53, %v2318_v53  ;;  %v3172_v54 = vpop.f32.mrb[53].mxu0 }
0x1266   : > { %v2321_v8 = vpop.f32.mrb[54].mxu0 }
0x1267   : > { %v3173_v55 = vpop.f32.mrb[55].mxu0  ;;  %3177 = vmatmul.mubr.msk.bf16.vlgmr.msra.gmra.mrb[52].mxu1 %vm1074_vm2, %v2324_v16 }
0x133a   : > { %v2362_v58 = vpop.f32.mrb[52].mxu1 }
0x133b   : > { %v2368_v60 = vadd.f32 %v2362_v58, %v2213_v44  ;;  %v3178_v61 = vpop.f32.mrb[53].mxu1 }
0x133c   : > { %v2365_v63 = vpop.f32.mrb[54].mxu1 }
0x133d   : > { %v2369_v0 = vadd.f32 %v4404_v51, %v2368_v60  ;;  %v3179_v59 = vpop.f32.mrb[55].mxu1  ;;  %v3363_v51 = vld [vmem:[%s4655_s3 + $0x8] sm:$0xff] (!%p2909_p0)  }
0x133f   : > { %v2371_v1 = vpack.c.bf16 %v2369_v0, %v2369_v0 }
0x1341   : > { %3183 = vmatmul.mubr.msk.bf16.vlgmr.msra.gmra.mrb[56].mxu0 %vm1074_vm2, %v2371_v1 }
0x1342   : > { %3187 = vmatpush3.bf16.msra.mxu0 (!%p2909_p0), %v3362_v5  ;;  %3202 = vmatprep.mubr.msk.bf16.mxu0 (!%p2909_p0), %vm3730_vm6, %v3729_v3 }
0x1343   : > { %3188 = vmatprep.subr.bf16.mxu0 (!%p2909_p0), %v3729_v3 }
0x1346   : > { %3189 = vmatpush3.bf16.msra.mxu0 (!%p2909_p0), %v3363_v51 }
0x1347   : > { %3190 = vmatprep.subr.bf16.mxu0 (!%p2909_p0), %v3729_v3 }
0x134a   : > { %3191 = vmatpush3.bf16.msra.mxu0 (!%p2909_p0), %v3364_v6 }
0x134b   : > { %3192 = vmatprep.subr.bf16.mxu0 (!%p2909_p0), %v3729_v3 }
0x134e   : > { %3193 = vmatpush3.bf16.msra.mxu0 (!%p2909_p0), %v3365_v7 }
0x134f   : > { %3194 = vmatprep.subr.bf16.mxu0 (!%p2909_p0), %v3729_v3 }
0x1352   : > { %3195 = vmatpush3.bf16.msra.mxu0 (!%p2909_p0), %v3366_v9 }
0x1353   : > { %3196 = vmatprep.subr.bf16.mxu0 (!%p2909_p0), %v3729_v3 }
0x1356   : > { %3197 = vmatpush3.bf16.msra.mxu0 (!%p2909_p0), %v3367_v10 }
0x1357   : > { %3198 = vmatprep.subr.bf16.mxu0 (!%p2909_p0), %v3729_v3 }
0x135a   : > { %3199 = vmatpush3.bf16.msra.mxu0 (!%p2909_p0), %v3368_v17 }
0x135b   : > { %3200 = vmatprep.subr.bf16.mxu0 (!%p2909_p0), %v3729_v3 }
0x135e   : > { %3201 = vmatpush3.bf16.msra.mxu0 (!%p2909_p0), %v3369_v21 }
0x1411   : > { %2420 = sbr.rel (%p2909_p0) target bundleno = 5689 (0x1639), region = 124 }
0x1414   : > { %v2409_v18 = vpop.f32.mrb[56].mxu0 }
0x1415   : > { %v2415_v2 = vadd.f32 %v2409_v18, %v2370_v50  ;;  %v3184_v26 = vpop.f32.mrb[57].mxu0 }
0x1416   : > { %v2412_v33 = vpop.f32.mrb[58].mxu0 }
0x1417   : > { %2416 = vst [vmem:[#allocation2 + $0x8] sm:$0xff] %v2415_v2  ;;  %v3185_v4 = vpop.f32.mrb[59].mxu0 }
0x141e   : > { %v2422_v12 = vld [vmem:[#allocation2 + $0x8] sm:$0xff] }
0x141f   : > { %v2431_v15 = vadd.f32 %v2910_v13, %v2422_v12 }
0x1421   : > { %v2433_v20 = vmax.f32 %v2431_v15, 0.0 }
0x1423   : > { %v2434_v22 = vpack.c.bf16 %v2433_v20, %v2432_v27 }
0x1425   : > { %3203 = vmatmul.mubr.bf16.vlgmr.msra.gmra.mrb[0].mxu0 %v2434_v22 }
0x14f8   : > { %v2540_v25 = vpop.f32.mrb[0].mxu0 }
0x14f9   : > { %v2541_v34 = vadd.f32 %v2911_v24, %v2540_v25  ;;  %v3204_v28 = vpop.f32.mrb[1].mxu0 }
0x14fa   : > { %v2543_v19 = vpop.f32.mrb[2].mxu0 }
0x14fb   : > { %v2544_v57 = vadd.f32 %v2911_v24, %v2543_v19  ;;  %v3205_v23 = vpop.f32.mrb[3].mxu0  ;;  %v2547_v30 = vsel %vm875_vm1, %v2541_v34, 0.0 }
0x14fc   : > { %2548 = vadd.xlane.f32.xlu0 %v2547_v30 }
0x14fd   : > { %v2550_v31 = vsel %vm875_vm1, %v2544_v57, 0.0 }
0x1500   : > { %2551 = vadd.xlane.f32.xlu0 %v2550_v31 }
0x1589   : > { %v2549_v32 = vpop.xlane.xlu0 %2548 }
0x158a   : > { %v2554_v35 = vmul.f32 0.03125, %v2549_v32 }
0x158c   : > { %v2556_v36 = vsub.f32 %v2541_v34, %v2554_v35 }
0x158d   : > { %v2552_v29 = vpop.xlane.xlu0 %2551 }
0x158e   : > { %v2555_v37 = vmul.f32 0.03125, %v2552_v29  ;;  %v2558_v38 = vmul.f32 %v2556_v36, %v2556_v36 }
0x1590   : > { %v2557_v39 = vsub.f32 %v2544_v57, %v2555_v37  ;;  %v2560_v40 = vsel %vm875_vm1, %v2558_v38, 0.0 }
0x1591   : > { %2561 = vadd.xlane.f32.xlu1 %v2560_v40 }
0x1592   : > { %v2559_v41 = vmul.f32 %v2557_v39, %v2557_v39 }
0x1594   : > { %v2563_v62 = vsel %vm875_vm1, %v2559_v41, 0.0 }
0x1595   : > { %2564 = vadd.xlane.f32.xlu1 %v2563_v62 }
0x161e   : > { %v2562_v42 = vpop.xlane.xlu1 %2561 }
0x161f   : > { %v2566_v43 = vmul.f32 0.03125, %v2562_v42 }
0x1621   : > { %v2568_v44 = vadd.f32 1e-05, %v2566_v43 }
0x1622   : > { %v2565_v45 = vpop.xlane.xlu1 %2564 }
0x1623   : > { %3370 = vrsqrt.f32 %v2568_v44  ;;  %v2567_v46 = vmul.f32 0.03125, %v2565_v45 }
0x1625   : > { %v2569_v56 = vadd.f32 1e-05, %v2567_v46 }
0x1627   : > { %3372 = vrsqrt.f32 %v2569_v56 }
0x162d   : > { %v3371_v47 = vpop.eup %3370 }
0x162e   : > { %v2572_v49 = vmul.f32 %v3371_v47, %v2556_v36 }
0x1630   : > { %v2581_v53 = vmul.f32 %v2920_v48, %v2572_v49 }
0x1631   : > { %v3373_v16 = vpop.eup %3372 }
0x1632   : > { %v2590_v54 = vadd.f32 %v2921_v52, %v2581_v53  ;;  %v2573_v8 = vmul.f32 %v3373_v16, %v2557_v39 }
0x1634   : > { %2592 = vst.msk [vmem:[#allocation17] sm:$0xff] %vm875_vm1, %v2590_v54  ;;  %v2582_v55 = vmul.f32 %v2920_v48, %v2573_v8 }
0x1636   : > { %v2591_v58 = vadd.f32 %v2921_v52, %v2582_v55 }
0x1638   : > { %2593 = vst.msk [vmem:[#allocation17 + $0x8] sm:$0xff] %vm875_vm1, %v2591_v58 }
0x1639 PF: > { %p3257_p13 = scmp.eq.s32.totalorder %s3969_s27, 3  ;;  %s3731_s24 = smov [#allocation17]  }
0x163a   : > { %s2603_s0 = sshll.u32 %s3731_s24, 4  ;;  %s2604_s0 = int_to_ptr.vmem [resolvable:$true] %s2603_s0 }
0x163b   : > { %s3612_s14 = scalar_lea.vmem %s2604_s0, 256  ;;  %p3619_p1 = scmp.lt.s32.totalorder %s2604_s0, %s2604_s0 }
0x163c   : > { %p3613_p9 = scmp.ne.s32.totalorder %s2604_s0, %s3612_s14  ;;  %p3620_p3 = scmp.lt.s32.totalorder %s3612_s14, %s3612_s14 }
0x163e   : > { %p3614_p10 = pnand %p3613_p9, %p3257_p13  ;;  %p3621_p8 = por %p3620_p3, %p3619_p1 }
0x1640   : > { %p3615_p7 = pneg %p3614_p10 }
0x1642   : > { %p3622_p11 = pnand %p3621_p8, %p3615_p7 }
0x1644   : > { %3625 = shalt.err (!%p3622_p11)
}
0x1645   : > { %s4660_s19 = sld [smem:[#allocation40_spill]] }
0x164b   : > { %s3626_s15 = scalar_lea.hbm %s4660_s19, 256 }
0x164c   : > { %p3627_p12 = scmp.ne.s32.totalorder %s4660_s19, %s3626_s15  ;;  %p3632_p4 = scmp.lt.u32.totalorder %s3626_s15, %s4660_s19 }
0x164e   : > { %p3628_p6 = pnand %p3627_p12, %p3257_p13 }
0x1650   : > { %p3629_p5 = pneg %p3628_p6 }
0x1652   : > { %p3634_p2 = pnand %p3632_p4, %p3629_p5 }
0x1654   : > { %3637 = shalt.err (!%p3634_p2)
}
0x1655   : > { %s3732_s7 = smov 128   ;;  %s3733_s29 = smov 8  }
0x1656   : > { %3225 = dma.vmem_to_hbm [thread:$0]  (%p3257_p13), %s2604_s0, 256, %s4660_s19, [#allocation5], %s3732_s7, %s3732_s7, %s3733_s29  }
0x1657   : > { %3683 = dma.done.wait (%p3257_p13), [#allocation5], 256  }
0x1658   : > { %3685 = vsyncadd (%p3257_p13), [#allocation5], 4294967040 }
0x1659 PF: > { %s4661_s28 = sld [smem:[#allocation26_spill]]  ;;  %s4662_s12 = sld [smem:[#allocation24_spill]] }
0x165a   : > { %s4663_s23 = sld [smem:[#allocation28_spill]]  ;;  %s4664_s24 = sld [smem:[#allocation25_spill]] }
0x165b   : > { %s4665_s25 = sld [smem:[#allocation27_spill]]  ;;  %s4666_s21 = smov %s3692_s22 }
0x165f   : > { %s40_s26 = sadd.s32 1, %s4661_s28   ;;  %s4667_s22 = smov %s4662_s12 }
0x1660   : > { %p37_p0 = scmp.ge.s32.totalorder %s40_s26, 6  }
0x1662   :  { %39 = sbr.rel (!%p37_p0) target bundleno = 25 (0x19), region = 217 }
0x1669   :  { %2619 = vsyncpa [#allocation4], 1 }
0x166a   :  { %2621 = vsyncpa [#allocation4 + $0x1], 1 }
0x166b   :  { %2622 = vsyncpa [#allocation7], 1 }
0x166c   :  { %2624 = vsyncpa [#allocation7 + $0x1], 1 }
0x166d   :  { %2625 = vsyncpa [#allocation10], 1 }
0x166e   :  { %2627 = vsyncpa [#allocation10 + $0x1], 1 }
0x166f   :  { %2628 = vsyncpa [#allocation13], 1 }
0x1670   :  { %2630 = vsyncpa [#allocation13 + $0x1], 1 }
0x1671   :  { %2631 = vsyncpa [#allocation16], 1 }
0x1672   :  { %2633 = vsyncpa [#allocation16 + $0x1], 1 }
0x1673   :  { %2634 = vsyncpa [#allocation5], 1 }
0x1674   :  { %2636 = vsyncpa [#allocation5 + $0x1], 1 }

</bundles_post_ra>
